<compile_context>
chip_gen: v7x
topology: tpu7x:2x2x1
jax: 0.10.0
libtpu: 0.0.40
codegen_flags: <defaults>
</compile_context>

<pallas_src>
import math

import jax
import jax.numpy as jnp
from jax import lax
from jax.experimental import pallas as pl
from jax.experimental.pallas import tpu as pltpu

H = 32          # l1 output / GRU hidden size
F = 64          # per-head MLP hidden size (fused head uses 2*F = 128 lanes)
LANES = 128     # slab lane width (one vreg lane extent)


def _build_layout():
    """Row offsets of each parameter block inside the single (ROWS, 128) slab.
    Every block starts on an 8-row (sublane-tile) boundary -> copy-free static slices."""
    blocks = [
        ("g1_m", 1), ("g1_c", 1), ("g1_whh", H), ("g1_bhh", 1),
        ("g2_wih", H), ("g2_bih", 1), ("g2_whh", H), ("g2_bhh", 1),
        ("w1l", H), ("w1g", H), ("b1c", 1), ("w2b", 2 * F), ("b2c", 1),
        ("w3t", 1), ("w3f", 1), ("b3t", 1), ("b3f", 1),
    ]
    row, table = 0, {}
    for name, r in blocks:
        table[name] = row
        row += -(-r // 8) * 8
    return table, row


_ROW, _SLAB_ROWS = _build_layout()


def meta_solver_kernel(a_ref, slab_ref, out_ref):
    n = out_ref.shape[0]
    f32 = jnp.float32

    def row(name):                      # (1, 128) parameter row
        o = _ROW[name]
        return slab_ref[o:o + 1, :]

    def blk(name, r):                   # (r, 128) parameter block
        o = _ROW[name]
        return slab_ref[o:o + r, :]

    def scalar(name):                   # (1, 1) scalar parameter
        o = _ROW[name]
        return slab_ref[o:o + 1, 0:1]

    a = a_ref[...]                                         # (n*n, 1) time-major scalars
    a_b = jnp.broadcast_to(a, (n * n, LANES))              # hoisted: single lane-broadcast

    # ---------------- GRU1 (batch = n sequences, seq length = n) ----------------
    # Input-side gate pre-activations for all (t, i) at once; l1 folded host-side:
    #   gi = a * m + c, lanes [r | z | n | 0].
    gi1 = a_b * row("g1_m") + row("g1_c")                  # (n*n, 128)
    gi1_n = gi1[:, 2 * H:3 * H]                            # (n*n, 32), sliced once (prologue)
    w1hh = blk("g1_whh", H)                                # (32, 128): [Whh_r.T|Whh_z.T|Whh_n.T|0]
    b1hh = row("g1_bhh")

    h = jnp.zeros((n, H), f32)
    for t in range(n):                                     # static full unroll (n small, known)
        lo, hi = t * n, (t + 1) * n
        gh = jnp.dot(h, w1hh, preferred_element_type=f32) + b1hh     # one MXU push per step
        s = gi1[lo:hi] + gh
        rz = jax.nn.sigmoid(s[:, :2 * H])                  # one EUP pass covers r and z
        r = rz[:, :H]
        z = rz[:, H:2 * H]
        ng = jnp.tanh(gi1_n[lo:hi] + r * gh[:, 2 * H:3 * H])
        h = (1.0 - z) * ng + z * h
    h1 = h                                                 # (n, 32): final hidden per sequence

    # ---------------- GRU2 (batch = 1, sequence = the n rows of h1) ----------------
    gi2 = jnp.dot(h1, blk("g2_wih", H), preferred_element_type=f32) + row("g2_bih")   # (n, 128)
    gi2_n = gi2[:, 2 * H:3 * H]
    w2hh = blk("g2_whh", H)
    b2hh = row("g2_bhh")

    h2 = jnp.zeros((1, H), f32)
    for t in range(n):
        gh = jnp.dot(h2, w2hh, preferred_element_type=f32) + b2hh
        s = gi2[t:t + 1] + gh
        rz = jax.nn.sigmoid(s[:, :2 * H])
        r = rz[:, :H]
        z = rz[:, H:2 * H]
        ng = jnp.tanh(gi2_n[t:t + 1] + r * gh[:, 2 * H:3 * H])
        h2 = (1.0 - z) * ng + z * h2                       # (1, 32)

    # ---------------- fused temp/logits head (lane-dense, 128-wide) ----------------
    # x_final = [h1 | broadcast(h2)]; the h2 ("global") part is one (1,128) row, broadcast-added.
    g_row = jnp.dot(h2, blk("w1g", H), preferred_element_type=f32) + row("b1c")       # (1, 128)
    y1 = jnp.maximum(jnp.dot(h1, blk("w1l", H), preferred_element_type=f32) + g_row, 0.0)
    y2 = jnp.maximum(jnp.dot(y1, blk("w2b", 2 * F), preferred_element_type=f32) + row("b2c"), 0.0)
    temp = jnp.sum(y2 * row("w3t"), axis=-1, keepdims=True) + scalar("b3t")            # (n, 1)
    logits_row = lax.dot_general(row("w3f"), y2, (((1,), (1,)), ((), ())),
                                 preferred_element_type=f32) + scalar("b3f")           # (1, n)

    # torch: (1,n) / (1,n,1) broadcast -> scaled[i, j] = logits[j] / temp[i]
    # (no clamping of temp, matching the PyTorch reference)
    scaled = logits_row * pl.reciprocal(temp, approx=False)          # (n, n)
    scaled = scaled - jnp.max(scaled, axis=-1, keepdims=True)
    e = jnp.exp(scaled)
    out_ref[...] = e * pl.reciprocal(jnp.sum(e, axis=-1, keepdims=True), approx=True)


def build_param_slab(p):
    """ONE-TIME host-side repack of all module parameters into a single lane-dense
    (ROWS, 128) f32 slab. Call once at parameter-load time (NOT per forward)."""
    def gate(w, g):
        return w[g * H:(g + 1) * H]

    l1_w = p['l1_w'].reshape(1, H)
    l1_b = p['l1_b'].reshape(1, H)

    # GRU1: fold l1 into input-side gates  =>  gi_g = a * m_g + c_g ; lanes [r|z|n]
    wih1, bih1 = p['gru1_wih'], p['gru1_bih']
    m_all = jnp.concatenate([l1_w @ gate(wih1, g).T for g in range(3)], axis=1)           # (1, 96)
    c_all = jnp.concatenate([l1_b @ gate(wih1, g).T + bih1[g * H:(g + 1) * H][None]
                             for g in range(3)], axis=1)                                  # (1, 96)
    whh1 = jnp.concatenate([gate(p['gru1_whh'], g).T for g in range(3)], axis=1)          # (32, 96)
    bhh1 = p['gru1_bhh'].reshape(1, 3 * H)

    wih2 = jnp.concatenate([gate(p['gru2_wih'], g).T for g in range(3)], axis=1)          # (32, 96)
    bih2 = p['gru2_bih'].reshape(1, 3 * H)
    whh2 = jnp.concatenate([gate(p['gru2_whh'], g).T for g in range(3)], axis=1)          # (32, 96)
    bhh2 = p['gru2_bhh'].reshape(1, 3 * H)

    # fused temp/final head: layer1 concat, layer2 block-diag, layer3 as two 128-wide rows.
    w1l = jnp.concatenate([p['t1_w'][:, :H].T, p['f1_w'][:, :H].T], axis=1)               # (32, 128)
    w1g = jnp.concatenate([p['t1_w'][:, H:].T, p['f1_w'][:, H:].T], axis=1)               # (32, 128)
    b1c = jnp.concatenate([p['t1_b'], p['f1_b']]).reshape(1, 2 * F)                       # (1, 128)
    zf = jnp.zeros((F, F), jnp.float32)
    w2b = jnp.block([[p['t2_w'].T, zf], [zf, p['f2_w'].T]])                               # (128, 128)
    b2c = jnp.concatenate([p['t2_b'], p['f2_b']]).reshape(1, 2 * F)                       # (1, 128)
    w3t = jnp.concatenate([p['t3_w'], jnp.zeros((1, F), jnp.float32)], axis=1)            # (1, 128)
    w3f = jnp.concatenate([jnp.zeros((1, F), jnp.float32), p['f3_w']], axis=1)            # (1, 128)
    b3t = p['t3_b'].reshape(1, 1)
    b3f = p['f3_b'].reshape(1, 1)

    pieces = {
        "g1_m": m_all, "g1_c": c_all, "g1_whh": whh1, "g1_bhh": bhh1,
        "g2_wih": wih2, "g2_bih": bih2, "g2_whh": whh2, "g2_bhh": bhh2,
        "w1l": w1l, "w1g": w1g, "b1c": b1c, "w2b": w2b, "b2c": b2c,
        "w3t": w3t, "w3f": w3f, "b3t": b3t, "b3f": b3f,
    }
    slab = jnp.zeros((_SLAB_ROWS, LANES), jnp.float32)
    for name, arr in pieces.items():
        o = _ROW[name]
        r, c = arr.shape
        slab = slab.at[o:o + r, :c].set(arr.astype(jnp.float32))
    return slab


@jax.jit
def meta_solver_forward(x, param_slab):
    # layout: x is (B, M, n, n); kernel consumes the (n*n, 1) time-major flattening of
    # x[0,0].T and emits the (n, n) softmax table, expanded to (1, n, n).
    A = x[0, 0].astype(jnp.float32)
    n = A.shape[-1]
    a_flat = jnp.transpose(A).reshape(n * n, 1)
    # NOTE: if n were not a multiple of 8, pad the time-major layout so each per-step
    # block starts on a sublane boundary (no effect at n=8).

    out = pl.pallas_call(
        meta_solver_kernel,
        out_shape=jax.ShapeDtypeStruct((n, n), jnp.float32),
        grid=(1,),
        in_specs=[
            pl.BlockSpec((n * n, 1), lambda i: (0, 0)),
            pl.BlockSpec((_SLAB_ROWS, LANES), lambda i: (0, 0)),
        ],
        out_specs=pl.BlockSpec((n, n), lambda i: (0, 0)),
        compiler_params=pltpu.CompilerParams(dimension_semantics=("arbitrary",)),
    )(a_flat, param_slab)
    return out[None]   # (1, n, n)


# ------------------------- pure-JAX reference (torch semantics) -------------------------
def reference_forward(x, p):
    HI = lax.Precision.HIGHEST
    x0 = x[0].astype(jnp.float32)                 # (M, n, n)
    n = x0.shape[-1]
    xe = x0[..., None]                            # (M, n, n, 1)
    x1 = jnp.einsum('...i,oi->...o', xe, p['l1_w'], precision=HI) + p['l1_b']
    x1 = x1[0]                                    # (n, n, 32): batch=n, seq=n

    def gru(seq, wih, whh, bih, bhh):
        B = seq.shape[0]
        h = jnp.zeros((B, H), jnp.float32)
        for t in range(seq.shape[1]):
            xt = seq[:, t, :]
            gi = jnp.dot(xt, wih.T, precision=HI) + bih
            gh = jnp.dot(h, whh.T, precision=HI) + bhh
            r = jax.nn.sigmoid(gi[:, :H] + gh[:, :H])
            z = jax.nn.sigmoid(gi[:, H:2 * H] + gh[:, H:2 * H])
            ng = jnp.tanh(gi[:, 2 * H:] + r * gh[:, 2 * H:])
            h = (1 - z) * ng + z * h
        return h

    h1 = gru(x1, p['gru1_wih'], p['gru1_whh'], p['gru1_bih'], p['gru1_bhh'])    # (n, 32)
    x_local = h1[None]                                                          # (1, n, 32)
    h2 = gru(x_local, p['gru2_wih'], p['gru2_whh'], p['gru2_bih'], p['gru2_bhh'])  # (1, 32)
    x_global = jnp.broadcast_to(h2[:, None, :], (1, n, H))
    x_final = jnp.concatenate([x_local, x_global], axis=-1)                     # (1, n, 64)

    def mlp(y, w1, b1, w2, b2, w3, b3):
        y = jax.nn.relu(jnp.dot(y, w1.T, precision=HI) + b1)
        y = jax.nn.relu(jnp.dot(y, w2.T, precision=HI) + b2)
        return jnp.dot(y, w3.T, precision=HI) + b3

    temp = mlp(x_final, p['t1_w'], p['t1_b'], p['t2_w'], p['t2_b'], p['t3_w'], p['t3_b'])
    logits = mlp(x_final, p['f1_w'], p['f1_b'], p['f2_w'], p['f2_b'], p['f3_w'], p['f3_b'])[..., 0]
    scaled = logits / temp                        # (1,n)/(1,n,1) -> (1,n,n)
    return jax.nn.softmax(scaled, axis=-1)


def init_params(key):
    def u(k, shape, bound):
        return jax.random.uniform(k, shape, jnp.float32, minval=-bound, maxval=bound)

    keys = iter(jax.random.split(key, 32))
    p = {}
    p['l1_w'] = u(next(keys), (H, 1), 1.0)
    p['l1_b'] = u(next(keys), (H,), 1.0)
    kg = 1.0 / math.sqrt(H)
    for name in ('gru1', 'gru2'):
        p[f'{name}_wih'] = u(next(keys), (3 * H, H), kg)
        p[f'{name}_whh'] = u(next(keys), (3 * H, H), kg)
        p[f'{name}_bih'] = u(next(keys), (3 * H,), kg)
        p[f'{name}_bhh'] = u(next(keys), (3 * H,), kg)
    k1 = 1.0 / math.sqrt(2 * H)
    k2 = 1.0 / math.sqrt(F)
    for name in ('t', 'f'):
        p[f'{name}1_w'] = u(next(keys), (F, 2 * H), k1)
        p[f'{name}1_b'] = u(next(keys), (F,), k1)
        p[f'{name}2_w'] = u(next(keys), (F, F), k2)
        p[f'{name}2_b'] = u(next(keys), (F,), k2)
        p[f'{name}3_w'] = u(next(keys), (1, F), k2)
        p[f'{name}3_b'] = u(next(keys), (1,), k2)
    return p


if __name__ == "__main__":
    key = jax.random.PRNGKey(0)
    kp, kx = jax.random.split(key)
    params = init_params(kp)

    # One-time parameter repack, hoisted out of the per-call path.
    param_slab = jax.block_until_ready(build_param_slab(params))

    n = 8
    x = jax.random.normal(kx, (2, 1, n, n), jnp.float32)

    out = meta_solver_forward(x, param_slab)
    out = jax.block_until_ready(out)

    ref = reference_forward(x, params)
    assert out.shape == (1, n, n), out.shape
    max_err = float(jnp.max(jnp.abs(out - ref)))
    if max_err > 1e-2:
        raise AssertionError(f"kernel vs reference mismatch: max_err={max_err}")

    print("KERNEL_OK")
</pallas_src>

<mosaic_0001>
module attributes {stable_mosaic.version = 11 : i64} {
  func.func @meta_solver_kernel(%arg0: i32, %arg1: memref<64x1xf32, #tpu.memory_space<vmem>>, %arg2: memref<376x128xf32, #tpu.memory_space<vmem>>, %arg3: memref<8x8xf32, #tpu.memory_space<vmem>>) attributes {dimension_semantics = [#tpu.dimension_semantics<arbitrary>], iteration_bounds = array<i64: 1>, scalar_prefetch = 0 : i64, scratch_operands = 0 : i64, tpu.core_type = #tpu.core_type<tc>, window_params = [{pipeline_mode = #tpu.pipeline_mode<synchronous>, transform_indices = @transform_0, window_bounds = array<i64: 64, 1>}, {pipeline_mode = #tpu.pipeline_mode<synchronous>, transform_indices = @transform_1, window_bounds = array<i64: 376, 128>}, {pipeline_mode = #tpu.pipeline_mode<synchronous>, transform_indices = @transform_2, window_bounds = array<i64: 8, 8>}]} {
    %c0 = arith.constant 0 : index
    %c0_0 = arith.constant 0 : index
    %0 = vector.load %arg1[%c0, %c0_0] : memref<64x1xf32, #tpu.memory_space<vmem>>, vector<64x1xf32>
    %1 = vector.shape_cast %0 : vector<64x1xf32> to vector<64x1xf32>
    %2 = vector.broadcast %1 : vector<64x1xf32> to vector<64x128xf32>
    %c0_1 = arith.constant 0 : index
    %c0_2 = arith.constant 0 : index
    %3 = vector.load %arg2[%c0_1, %c0_2] : memref<376x128xf32, #tpu.memory_space<vmem>>, vector<1x128xf32>
    %4 = vector.broadcast %3 : vector<1x128xf32> to vector<64x128xf32>
    %5 = arith.mulf %2, %4 : vector<64x128xf32>
    %c8 = arith.constant 8 : index
    %c0_3 = arith.constant 0 : index
    %6 = vector.load %arg2[%c8, %c0_3] : memref<376x128xf32, #tpu.memory_space<vmem>>, vector<1x128xf32>
    %7 = vector.broadcast %6 : vector<1x128xf32> to vector<64x128xf32>
    %8 = arith.addf %5, %7 : vector<64x128xf32>
    %9 = vector.extract_strided_slice %8 {offsets = [0, 64], sizes = [64, 32], strides = [1, 1]} : vector<64x128xf32> to vector<64x32xf32>
    %c16 = arith.constant 16 : index
    %c0_4 = arith.constant 0 : index
    %10 = vector.load %arg2[%c16, %c0_4] : memref<376x128xf32, #tpu.memory_space<vmem>>, vector<32x128xf32>
    %c48 = arith.constant 48 : index
    %c0_5 = arith.constant 0 : index
    %11 = vector.load %arg2[%c48, %c0_5] : memref<376x128xf32, #tpu.memory_space<vmem>>, vector<1x128xf32>
    %cst = arith.constant 0.000000e+00 : f32
    %12 = vector.broadcast %cst : f32 to vector<8x32xf32>
    %cst_6 = arith.constant dense<0.000000e+00> : vector<8x128xf32>
    %13 = tpu.matmul %12, %10, %cst_6 {dimension_numbers = #tpu.dot_dimension_numbers<[1], [0], [0], [1], [0, 0, 1, 1], [], []>} : vector<8x32xf32>, vector<32x128xf32>, vector<8x128xf32> -> vector<8x128xf32>
    %14 = vector.broadcast %11 : vector<1x128xf32> to vector<8x128xf32>
    %15 = arith.addf %13, %14 : vector<8x128xf32>
    %16 = vector.extract_strided_slice %8 {offsets = [0, 0], sizes = [8, 128], strides = [1, 1]} : vector<64x128xf32> to vector<8x128xf32>
    %17 = arith.addf %16, %15 : vector<8x128xf32>
    %18 = vector.extract_strided_slice %17 {offsets = [0, 0], sizes = [8, 64], strides = [1, 1]} : vector<8x128xf32> to vector<8x64xf32>
    %19 = arith.negf %18 : vector<8x64xf32>
    %20 = math.exp %19 : vector<8x64xf32>
    %cst_7 = arith.constant 1.000000e+00 : f32
    %21 = vector.broadcast %cst_7 : f32 to vector<8x64xf32>
    %22 = arith.addf %21, %20 : vector<8x64xf32>
    %23 = arith.divf %21, %22 : vector<8x64xf32>
    %24 = vector.extract_strided_slice %23 {offsets = [0, 0], sizes = [8, 32], strides = [1, 1]} : vector<8x64xf32> to vector<8x32xf32>
    %25 = vector.extract_strided_slice %23 {offsets = [0, 32], sizes = [8, 32], strides = [1, 1]} : vector<8x64xf32> to vector<8x32xf32>
    %26 = vector.extract_strided_slice %9 {offsets = [0, 0], sizes = [8, 32], strides = [1, 1]} : vector<64x32xf32> to vector<8x32xf32>
    %27 = vector.extract_strided_slice %15 {offsets = [0, 64], sizes = [8, 32], strides = [1, 1]} : vector<8x128xf32> to vector<8x32xf32>
    %28 = arith.mulf %24, %27 : vector<8x32xf32>
    %29 = arith.addf %26, %28 : vector<8x32xf32>
    %30 = math.tanh %29 : vector<8x32xf32>
    %cst_8 = arith.constant 1.000000e+00 : f32
    %31 = vector.broadcast %cst_8 : f32 to vector<8x32xf32>
    %32 = arith.subf %31, %25 : vector<8x32xf32>
    %33 = arith.mulf %32, %30 : vector<8x32xf32>
    %34 = arith.mulf %25, %12 : vector<8x32xf32>
    %35 = arith.addf %33, %34 : vector<8x32xf32>
    %cst_9 = arith.constant dense<0.000000e+00> : vector<8x128xf32>
    %36 = tpu.matmul %35, %10, %cst_9 {dimension_numbers = #tpu.dot_dimension_numbers<[1], [0], [0], [1], [0, 0, 1, 1], [], []>} : vector<8x32xf32>, vector<32x128xf32>, vector<8x128xf32> -> vector<8x128xf32>
    %37 = vector.broadcast %11 : vector<1x128xf32> to vector<8x128xf32>
    %38 = arith.addf %36, %37 : vector<8x128xf32>
    %39 = vector.extract_strided_slice %8 {offsets = [8, 0], sizes = [8, 128], strides = [1, 1]} : vector<64x128xf32> to vector<8x128xf32>
    %40 = arith.addf %39, %38 : vector<8x128xf32>
    %41 = vector.extract_strided_slice %40 {offsets = [0, 0], sizes = [8, 64], strides = [1, 1]} : vector<8x128xf32> to vector<8x64xf32>
    %42 = arith.negf %41 : vector<8x64xf32>
    %43 = math.exp %42 : vector<8x64xf32>
    %cst_10 = arith.constant 1.000000e+00 : f32
    %44 = vector.broadcast %cst_10 : f32 to vector<8x64xf32>
    %45 = arith.addf %44, %43 : vector<8x64xf32>
    %46 = arith.divf %44, %45 : vector<8x64xf32>
    %47 = vector.extract_strided_slice %46 {offsets = [0, 0], sizes = [8, 32], strides = [1, 1]} : vector<8x64xf32> to vector<8x32xf32>
    %48 = vector.extract_strided_slice %46 {offsets = [0, 32], sizes = [8, 32], strides = [1, 1]} : vector<8x64xf32> to vector<8x32xf32>
    %49 = vector.extract_strided_slice %9 {offsets = [8, 0], sizes = [8, 32], strides = [1, 1]} : vector<64x32xf32> to vector<8x32xf32>
    %50 = vector.extract_strided_slice %38 {offsets = [0, 64], sizes = [8, 32], strides = [1, 1]} : vector<8x128xf32> to vector<8x32xf32>
    %51 = arith.mulf %47, %50 : vector<8x32xf32>
    %52 = arith.addf %49, %51 : vector<8x32xf32>
    %53 = math.tanh %52 : vector<8x32xf32>
    %cst_11 = arith.constant 1.000000e+00 : f32
    %54 = vector.broadcast %cst_11 : f32 to vector<8x32xf32>
    %55 = arith.subf %54, %48 : vector<8x32xf32>
    %56 = arith.mulf %55, %53 : vector<8x32xf32>
    %57 = arith.mulf %48, %35 : vector<8x32xf32>
    %58 = arith.addf %56, %57 : vector<8x32xf32>
    %cst_12 = arith.constant dense<0.000000e+00> : vector<8x128xf32>
    %59 = tpu.matmul %58, %10, %cst_12 {dimension_numbers = #tpu.dot_dimension_numbers<[1], [0], [0], [1], [0, 0, 1, 1], [], []>} : vector<8x32xf32>, vector<32x128xf32>, vector<8x128xf32> -> vector<8x128xf32>
    %60 = vector.broadcast %11 : vector<1x128xf32> to vector<8x128xf32>
    %61 = arith.addf %59, %60 : vector<8x128xf32>
    %62 = vector.extract_strided_slice %8 {offsets = [16, 0], sizes = [8, 128], strides = [1, 1]} : vector<64x128xf32> to vector<8x128xf32>
    %63 = arith.addf %62, %61 : vector<8x128xf32>
    %64 = vector.extract_strided_slice %63 {offsets = [0, 0], sizes = [8, 64], strides = [1, 1]} : vector<8x128xf32> to vector<8x64xf32>
    %65 = arith.negf %64 : vector<8x64xf32>
    %66 = math.exp %65 : vector<8x64xf32>
    %cst_13 = arith.constant 1.000000e+00 : f32
    %67 = vector.broadcast %cst_13 : f32 to vector<8x64xf32>
    %68 = arith.addf %67, %66 : vector<8x64xf32>
    %69 = arith.divf %67, %68 : vector<8x64xf32>
    %70 = vector.extract_strided_slice %69 {offsets = [0, 0], sizes = [8, 32], strides = [1, 1]} : vector<8x64xf32> to vector<8x32xf32>
    %71 = vector.extract_strided_slice %69 {offsets = [0, 32], sizes = [8, 32], strides = [1, 1]} : vector<8x64xf32> to vector<8x32xf32>
    %72 = vector.extract_strided_slice %9 {offsets = [16, 0], sizes = [8, 32], strides = [1, 1]} : vector<64x32xf32> to vector<8x32xf32>
    %73 = vector.extract_strided_slice %61 {offsets = [0, 64], sizes = [8, 32], strides = [1, 1]} : vector<8x128xf32> to vector<8x32xf32>
    %74 = arith.mulf %70, %73 : vector<8x32xf32>
    %75 = arith.addf %72, %74 : vector<8x32xf32>
    %76 = math.tanh %75 : vector<8x32xf32>
    %cst_14 = arith.constant 1.000000e+00 : f32
    %77 = vector.broadcast %cst_14 : f32 to vector<8x32xf32>
    %78 = arith.subf %77, %71 : vector<8x32xf32>
    %79 = arith.mulf %78, %76 : vector<8x32xf32>
    %80 = arith.mulf %71, %58 : vector<8x32xf32>
    %81 = arith.addf %79, %80 : vector<8x32xf32>
    %cst_15 = arith.constant dense<0.000000e+00> : vector<8x128xf32>
    %82 = tpu.matmul %81, %10, %cst_15 {dimension_numbers = #tpu.dot_dimension_numbers<[1], [0], [0], [1], [0, 0, 1, 1], [], []>} : vector<8x32xf32>, vector<32x128xf32>, vector<8x128xf32> -> vector<8x128xf32>
    %83 = vector.broadcast %11 : vector<1x128xf32> to vector<8x128xf32>
    %84 = arith.addf %82, %83 : vector<8x128xf32>
    %85 = vector.extract_strided_slice %8 {offsets = [24, 0], sizes = [8, 128], strides = [1, 1]} : vector<64x128xf32> to vector<8x128xf32>
    %86 = arith.addf %85, %84 : vector<8x128xf32>
    %87 = vector.extract_strided_slice %86 {offsets = [0, 0], sizes = [8, 64], strides = [1, 1]} : vector<8x128xf32> to vector<8x64xf32>
    %88 = arith.negf %87 : vector<8x64xf32>
    %89 = math.exp %88 : vector<8x64xf32>
    %cst_16 = arith.constant 1.000000e+00 : f32
    %90 = vector.broadcast %cst_16 : f32 to vector<8x64xf32>
    %91 = arith.addf %90, %89 : vector<8x64xf32>
    %92 = arith.divf %90, %91 : vector<8x64xf32>
    %93 = vector.extract_strided_slice %92 {offsets = [0, 0], sizes = [8, 32], strides = [1, 1]} : vector<8x64xf32> to vector<8x32xf32>
    %94 = vector.extract_strided_slice %92 {offsets = [0, 32], sizes = [8, 32], strides = [1, 1]} : vector<8x64xf32> to vector<8x32xf32>
    %95 = vector.extract_strided_slice %9 {offsets = [24, 0], sizes = [8, 32], strides = [1, 1]} : vector<64x32xf32> to vector<8x32xf32>
    %96 = vector.extract_strided_slice %84 {offsets = [0, 64], sizes = [8, 32], strides = [1, 1]} : vector<8x128xf32> to vector<8x32xf32>
    %97 = arith.mulf %93, %96 : vector<8x32xf32>
    %98 = arith.addf %95, %97 : vector<8x32xf32>
    %99 = math.tanh %98 : vector<8x32xf32>
    %cst_17 = arith.constant 1.000000e+00 : f32
    %100 = vector.broadcast %cst_17 : f32 to vector<8x32xf32>
    %101 = arith.subf %100, %94 : vector<8x32xf32>
    %102 = arith.mulf %101, %99 : vector<8x32xf32>
    %103 = arith.mulf %94, %81 : vector<8x32xf32>
    %104 = arith.addf %102, %103 : vector<8x32xf32>
    %cst_18 = arith.constant dense<0.000000e+00> : vector<8x128xf32>
    %105 = tpu.matmul %104, %10, %cst_18 {dimension_numbers = #tpu.dot_dimension_numbers<[1], [0], [0], [1], [0, 0, 1, 1], [], []>} : vector<8x32xf32>, vector<32x128xf32>, vector<8x128xf32> -> vector<8x128xf32>
    %106 = vector.broadcast %11 : vector<1x128xf32> to vector<8x128xf32>
    %107 = arith.addf %105, %106 : vector<8x128xf32>
    %108 = vector.extract_strided_slice %8 {offsets = [32, 0], sizes = [8, 128], strides = [1, 1]} : vector<64x128xf32> to vector<8x128xf32>
    %109 = arith.addf %108, %107 : vector<8x128xf32>
    %110 = vector.extract_strided_slice %109 {offsets = [0, 0], sizes = [8, 64], strides = [1, 1]} : vector<8x128xf32> to vector<8x64xf32>
    %111 = arith.negf %110 : vector<8x64xf32>
    %112 = math.exp %111 : vector<8x64xf32>
    %cst_19 = arith.constant 1.000000e+00 : f32
    %113 = vector.broadcast %cst_19 : f32 to vector<8x64xf32>
    %114 = arith.addf %113, %112 : vector<8x64xf32>
    %115 = arith.divf %113, %114 : vector<8x64xf32>
    %116 = vector.extract_strided_slice %115 {offsets = [0, 0], sizes = [8, 32], strides = [1, 1]} : vector<8x64xf32> to vector<8x32xf32>
    %117 = vector.extract_strided_slice %115 {offsets = [0, 32], sizes = [8, 32], strides = [1, 1]} : vector<8x64xf32> to vector<8x32xf32>
    %118 = vector.extract_strided_slice %9 {offsets = [32, 0], sizes = [8, 32], strides = [1, 1]} : vector<64x32xf32> to vector<8x32xf32>
    %119 = vector.extract_strided_slice %107 {offsets = [0, 64], sizes = [8, 32], strides = [1, 1]} : vector<8x128xf32> to vector<8x32xf32>
    %120 = arith.mulf %116, %119 : vector<8x32xf32>
    %121 = arith.addf %118, %120 : vector<8x32xf32>
    %122 = math.tanh %121 : vector<8x32xf32>
    %cst_20 = arith.constant 1.000000e+00 : f32
    %123 = vector.broadcast %cst_20 : f32 to vector<8x32xf32>
    %124 = arith.subf %123, %117 : vector<8x32xf32>
    %125 = arith.mulf %124, %122 : vector<8x32xf32>
    %126 = arith.mulf %117, %104 : vector<8x32xf32>
    %127 = arith.addf %125, %126 : vector<8x32xf32>
    %cst_21 = arith.constant dense<0.000000e+00> : vector<8x128xf32>
    %128 = tpu.matmul %127, %10, %cst_21 {dimension_numbers = #tpu.dot_dimension_numbers<[1], [0], [0], [1], [0, 0, 1, 1], [], []>} : vector<8x32xf32>, vector<32x128xf32>, vector<8x128xf32> -> vector<8x128xf32>
    %129 = vector.broadcast %11 : vector<1x128xf32> to vector<8x128xf32>
    %130 = arith.addf %128, %129 : vector<8x128xf32>
    %131 = vector.extract_strided_slice %8 {offsets = [40, 0], sizes = [8, 128], strides = [1, 1]} : vector<64x128xf32> to vector<8x128xf32>
    %132 = arith.addf %131, %130 : vector<8x128xf32>
    %133 = vector.extract_strided_slice %132 {offsets = [0, 0], sizes = [8, 64], strides = [1, 1]} : vector<8x128xf32> to vector<8x64xf32>
    %134 = arith.negf %133 : vector<8x64xf32>
    %135 = math.exp %134 : vector<8x64xf32>
    %cst_22 = arith.constant 1.000000e+00 : f32
    %136 = vector.broadcast %cst_22 : f32 to vector<8x64xf32>
    %137 = arith.addf %136, %135 : vector<8x64xf32>
    %138 = arith.divf %136, %137 : vector<8x64xf32>
    %139 = vector.extract_strided_slice %138 {offsets = [0, 0], sizes = [8, 32], strides = [1, 1]} : vector<8x64xf32> to vector<8x32xf32>
    %140 = vector.extract_strided_slice %138 {offsets = [0, 32], sizes = [8, 32], strides = [1, 1]} : vector<8x64xf32> to vector<8x32xf32>
    %141 = vector.extract_strided_slice %9 {offsets = [40, 0], sizes = [8, 32], strides = [1, 1]} : vector<64x32xf32> to vector<8x32xf32>
    %142 = vector.extract_strided_slice %130 {offsets = [0, 64], sizes = [8, 32], strides = [1, 1]} : vector<8x128xf32> to vector<8x32xf32>
    %143 = arith.mulf %139, %142 : vector<8x32xf32>
    %144 = arith.addf %141, %143 : vector<8x32xf32>
    %145 = math.tanh %144 : vector<8x32xf32>
    %cst_23 = arith.constant 1.000000e+00 : f32
    %146 = vector.broadcast %cst_23 : f32 to vector<8x32xf32>
    %147 = arith.subf %146, %140 : vector<8x32xf32>
    %148 = arith.mulf %147, %145 : vector<8x32xf32>
    %149 = arith.mulf %140, %127 : vector<8x32xf32>
    %150 = arith.addf %148, %149 : vector<8x32xf32>
    %cst_24 = arith.constant dense<0.000000e+00> : vector<8x128xf32>
    %151 = tpu.matmul %150, %10, %cst_24 {dimension_numbers = #tpu.dot_dimension_numbers<[1], [0], [0], [1], [0, 0, 1, 1], [], []>} : vector<8x32xf32>, vector<32x128xf32>, vector<8x128xf32> -> vector<8x128xf32>
    %152 = vector.broadcast %11 : vector<1x128xf32> to vector<8x128xf32>
    %153 = arith.addf %151, %152 : vector<8x128xf32>
    %154 = vector.extract_strided_slice %8 {offsets = [48, 0], sizes = [8, 128], strides = [1, 1]} : vector<64x128xf32> to vector<8x128xf32>
    %155 = arith.addf %154, %153 : vector<8x128xf32>
    %156 = vector.extract_strided_slice %155 {offsets = [0, 0], sizes = [8, 64], strides = [1, 1]} : vector<8x128xf32> to vector<8x64xf32>
    %157 = arith.negf %156 : vector<8x64xf32>
    %158 = math.exp %157 : vector<8x64xf32>
    %cst_25 = arith.constant 1.000000e+00 : f32
    %159 = vector.broadcast %cst_25 : f32 to vector<8x64xf32>
    %160 = arith.addf %159, %158 : vector<8x64xf32>
    %161 = arith.divf %159, %160 : vector<8x64xf32>
    %162 = vector.extract_strided_slice %161 {offsets = [0, 0], sizes = [8, 32], strides = [1, 1]} : vector<8x64xf32> to vector<8x32xf32>
    %163 = vector.extract_strided_slice %161 {offsets = [0, 32], sizes = [8, 32], strides = [1, 1]} : vector<8x64xf32> to vector<8x32xf32>
    %164 = vector.extract_strided_slice %9 {offsets = [48, 0], sizes = [8, 32], strides = [1, 1]} : vector<64x32xf32> to vector<8x32xf32>
    %165 = vector.extract_strided_slice %153 {offsets = [0, 64], sizes = [8, 32], strides = [1, 1]} : vector<8x128xf32> to vector<8x32xf32>
    %166 = arith.mulf %162, %165 : vector<8x32xf32>
    %167 = arith.addf %164, %166 : vector<8x32xf32>
    %168 = math.tanh %167 : vector<8x32xf32>
    %cst_26 = arith.constant 1.000000e+00 : f32
    %169 = vector.broadcast %cst_26 : f32 to vector<8x32xf32>
    %170 = arith.subf %169, %163 : vector<8x32xf32>
    %171 = arith.mulf %170, %168 : vector<8x32xf32>
    %172 = arith.mulf %163, %150 : vector<8x32xf32>
    %173 = arith.addf %171, %172 : vector<8x32xf32>
    %cst_27 = arith.constant dense<0.000000e+00> : vector<8x128xf32>
    %174 = tpu.matmul %173, %10, %cst_27 {dimension_numbers = #tpu.dot_dimension_numbers<[1], [0], [0], [1], [0, 0, 1, 1], [], []>} : vector<8x32xf32>, vector<32x128xf32>, vector<8x128xf32> -> vector<8x128xf32>
    %175 = vector.broadcast %11 : vector<1x128xf32> to vector<8x128xf32>
    %176 = arith.addf %174, %175 : vector<8x128xf32>
    %177 = vector.extract_strided_slice %8 {offsets = [56, 0], sizes = [8, 128], strides = [1, 1]} : vector<64x128xf32> to vector<8x128xf32>
    %178 = arith.addf %177, %176 : vector<8x128xf32>
    %179 = vector.extract_strided_slice %178 {offsets = [0, 0], sizes = [8, 64], strides = [1, 1]} : vector<8x128xf32> to vector<8x64xf32>
    %180 = arith.negf %179 : vector<8x64xf32>
    %181 = math.exp %180 : vector<8x64xf32>
    %cst_28 = arith.constant 1.000000e+00 : f32
    %182 = vector.broadcast %cst_28 : f32 to vector<8x64xf32>
    %183 = arith.addf %182, %181 : vector<8x64xf32>
    %184 = arith.divf %182, %183 : vector<8x64xf32>
    %185 = vector.extract_strided_slice %184 {offsets = [0, 0], sizes = [8, 32], strides = [1, 1]} : vector<8x64xf32> to vector<8x32xf32>
    %186 = vector.extract_strided_slice %184 {offsets = [0, 32], sizes = [8, 32], strides = [1, 1]} : vector<8x64xf32> to vector<8x32xf32>
    %187 = vector.extract_strided_slice %9 {offsets = [56, 0], sizes = [8, 32], strides = [1, 1]} : vector<64x32xf32> to vector<8x32xf32>
    %188 = vector.extract_strided_slice %176 {offsets = [0, 64], sizes = [8, 32], strides = [1, 1]} : vector<8x128xf32> to vector<8x32xf32>
    %189 = arith.mulf %185, %188 : vector<8x32xf32>
    %190 = arith.addf %187, %189 : vector<8x32xf32>
    %191 = math.tanh %190 : vector<8x32xf32>
    %cst_29 = arith.constant 1.000000e+00 : f32
    %192 = vector.broadcast %cst_29 : f32 to vector<8x32xf32>
    %193 = arith.subf %192, %186 : vector<8x32xf32>
    %194 = arith.mulf %193, %191 : vector<8x32xf32>
    %195 = arith.mulf %186, %173 : vector<8x32xf32>
    %196 = arith.addf %194, %195 : vector<8x32xf32>
    %c56 = arith.constant 56 : index
    %c0_30 = arith.constant 0 : index
    %197 = vector.load %arg2[%c56, %c0_30] : memref<376x128xf32, #tpu.memory_space<vmem>>, vector<32x128xf32>
    %cst_31 = arith.constant dense<0.000000e+00> : vector<8x128xf32>
    %198 = tpu.matmul %196, %197, %cst_31 {dimension_numbers = #tpu.dot_dimension_numbers<[1], [0], [0], [1], [0, 0, 1, 1], [], []>} : vector<8x32xf32>, vector<32x128xf32>, vector<8x128xf32> -> vector<8x128xf32>
    %c88 = arith.constant 88 : index
    %c0_32 = arith.constant 0 : index
    %199 = vector.load %arg2[%c88, %c0_32] : memref<376x128xf32, #tpu.memory_space<vmem>>, vector<1x128xf32>
    %200 = vector.broadcast %199 : vector<1x128xf32> to vector<8x128xf32>
    %201 = arith.addf %198, %200 : vector<8x128xf32>
    %202 = vector.extract_strided_slice %201 {offsets = [0, 64], sizes = [8, 32], strides = [1, 1]} : vector<8x128xf32> to vector<8x32xf32>
    %c96 = arith.constant 96 : index
    %c0_33 = arith.constant 0 : index
    %203 = vector.load %arg2[%c96, %c0_33] : memref<376x128xf32, #tpu.memory_space<vmem>>, vector<32x128xf32>
    %c128 = arith.constant 128 : index
    %c0_34 = arith.constant 0 : index
    %204 = vector.load %arg2[%c128, %c0_34] : memref<376x128xf32, #tpu.memory_space<vmem>>, vector<1x128xf32>
    %cst_35 = arith.constant 0.000000e+00 : f32
    %205 = vector.broadcast %cst_35 : f32 to vector<1x32xf32>
    %cst_36 = arith.constant dense<0.000000e+00> : vector<1x128xf32>
    %206 = tpu.matmul %205, %203, %cst_36 {dimension_numbers = #tpu.dot_dimension_numbers<[1], [0], [0], [1], [0, 0, 1, 1], [], []>} : vector<1x32xf32>, vector<32x128xf32>, vector<1x128xf32> -> vector<1x128xf32>
    %207 = arith.addf %206, %204 : vector<1x128xf32>
    %208 = vector.extract_strided_slice %201 {offsets = [0, 0], sizes = [1, 128], strides = [1, 1]} : vector<8x128xf32> to vector<1x128xf32>
    %209 = arith.addf %208, %207 : vector<1x128xf32>
    %210 = vector.extract_strided_slice %209 {offsets = [0, 0], sizes = [1, 64], strides = [1, 1]} : vector<1x128xf32> to vector<1x64xf32>
    %211 = arith.negf %210 : vector<1x64xf32>
    %212 = math.exp %211 : vector<1x64xf32>
    %cst_37 = arith.constant 1.000000e+00 : f32
    %213 = vector.broadcast %cst_37 : f32 to vector<1x64xf32>
    %214 = arith.addf %213, %212 : vector<1x64xf32>
    %215 = arith.divf %213, %214 : vector<1x64xf32>
    %216 = vector.extract_strided_slice %215 {offsets = [0, 0], sizes = [1, 32], strides = [1, 1]} : vector<1x64xf32> to vector<1x32xf32>
    %217 = vector.extract_strided_slice %215 {offsets = [0, 32], sizes = [1, 32], strides = [1, 1]} : vector<1x64xf32> to vector<1x32xf32>
    %218 = vector.extract_strided_slice %202 {offsets = [0, 0], sizes = [1, 32], strides = [1, 1]} : vector<8x32xf32> to vector<1x32xf32>
    %219 = vector.extract_strided_slice %207 {offsets = [0, 64], sizes = [1, 32], strides = [1, 1]} : vector<1x128xf32> to vector<1x32xf32>
    %220 = arith.mulf %216, %219 : vector<1x32xf32>
    %221 = arith.addf %218, %220 : vector<1x32xf32>
    %222 = math.tanh %221 : vector<1x32xf32>
    %cst_38 = arith.constant 1.000000e+00 : f32
    %223 = vector.broadcast %cst_38 : f32 to vector<1x32xf32>
    %224 = arith.subf %223, %217 : vector<1x32xf32>
    %225 = arith.mulf %224, %222 : vector<1x32xf32>
    %226 = arith.mulf %217, %205 : vector<1x32xf32>
    %227 = arith.addf %225, %226 : vector<1x32xf32>
    %cst_39 = arith.constant dense<0.000000e+00> : vector<1x128xf32>
    %228 = tpu.matmul %227, %203, %cst_39 {dimension_numbers = #tpu.dot_dimension_numbers<[1], [0], [0], [1], [0, 0, 1, 1], [], []>} : vector<1x32xf32>, vector<32x128xf32>, vector<1x128xf32> -> vector<1x128xf32>
    %229 = arith.addf %228, %204 : vector<1x128xf32>
    %230 = vector.extract_strided_slice %201 {offsets = [1, 0], sizes = [1, 128], strides = [1, 1]} : vector<8x128xf32> to vector<1x128xf32>
    %231 = arith.addf %230, %229 : vector<1x128xf32>
    %232 = vector.extract_strided_slice %231 {offsets = [0, 0], sizes = [1, 64], strides = [1, 1]} : vector<1x128xf32> to vector<1x64xf32>
    %233 = arith.negf %232 : vector<1x64xf32>
    %234 = math.exp %233 : vector<1x64xf32>
    %cst_40 = arith.constant 1.000000e+00 : f32
    %235 = vector.broadcast %cst_40 : f32 to vector<1x64xf32>
    %236 = arith.addf %235, %234 : vector<1x64xf32>
    %237 = arith.divf %235, %236 : vector<1x64xf32>
    %238 = vector.extract_strided_slice %237 {offsets = [0, 0], sizes = [1, 32], strides = [1, 1]} : vector<1x64xf32> to vector<1x32xf32>
    %239 = vector.extract_strided_slice %237 {offsets = [0, 32], sizes = [1, 32], strides = [1, 1]} : vector<1x64xf32> to vector<1x32xf32>
    %240 = vector.extract_strided_slice %202 {offsets = [1, 0], sizes = [1, 32], strides = [1, 1]} : vector<8x32xf32> to vector<1x32xf32>
    %241 = vector.extract_strided_slice %229 {offsets = [0, 64], sizes = [1, 32], strides = [1, 1]} : vector<1x128xf32> to vector<1x32xf32>
    %242 = arith.mulf %238, %241 : vector<1x32xf32>
    %243 = arith.addf %240, %242 : vector<1x32xf32>
    %244 = math.tanh %243 : vector<1x32xf32>
    %cst_41 = arith.constant 1.000000e+00 : f32
    %245 = vector.broadcast %cst_41 : f32 to vector<1x32xf32>
    %246 = arith.subf %245, %239 : vector<1x32xf32>
    %247 = arith.mulf %246, %244 : vector<1x32xf32>
    %248 = arith.mulf %239, %227 : vector<1x32xf32>
    %249 = arith.addf %247, %248 : vector<1x32xf32>
    %cst_42 = arith.constant dense<0.000000e+00> : vector<1x128xf32>
    %250 = tpu.matmul %249, %203, %cst_42 {dimension_numbers = #tpu.dot_dimension_numbers<[1], [0], [0], [1], [0, 0, 1, 1], [], []>} : vector<1x32xf32>, vector<32x128xf32>, vector<1x128xf32> -> vector<1x128xf32>
    %251 = arith.addf %250, %204 : vector<1x128xf32>
    %252 = vector.extract_strided_slice %201 {offsets = [2, 0], sizes = [1, 128], strides = [1, 1]} : vector<8x128xf32> to vector<1x128xf32>
    %253 = arith.addf %252, %251 : vector<1x128xf32>
    %254 = vector.extract_strided_slice %253 {offsets = [0, 0], sizes = [1, 64], strides = [1, 1]} : vector<1x128xf32> to vector<1x64xf32>
    %255 = arith.negf %254 : vector<1x64xf32>
    %256 = math.exp %255 : vector<1x64xf32>
    %cst_43 = arith.constant 1.000000e+00 : f32
    %257 = vector.broadcast %cst_43 : f32 to vector<1x64xf32>
    %258 = arith.addf %257, %256 : vector<1x64xf32>
    %259 = arith.divf %257, %258 : vector<1x64xf32>
    %260 = vector.extract_strided_slice %259 {offsets = [0, 0], sizes = [1, 32], strides = [1, 1]} : vector<1x64xf32> to vector<1x32xf32>
    %261 = vector.extract_strided_slice %259 {offsets = [0, 32], sizes = [1, 32], strides = [1, 1]} : vector<1x64xf32> to vector<1x32xf32>
    %262 = vector.extract_strided_slice %202 {offsets = [2, 0], sizes = [1, 32], strides = [1, 1]} : vector<8x32xf32> to vector<1x32xf32>
    %263 = vector.extract_strided_slice %251 {offsets = [0, 64], sizes = [1, 32], strides = [1, 1]} : vector<1x128xf32> to vector<1x32xf32>
    %264 = arith.mulf %260, %263 : vector<1x32xf32>
    %265 = arith.addf %262, %264 : vector<1x32xf32>
    %266 = math.tanh %265 : vector<1x32xf32>
    %cst_44 = arith.constant 1.000000e+00 : f32
    %267 = vector.broadcast %cst_44 : f32 to vector<1x32xf32>
    %268 = arith.subf %267, %261 : vector<1x32xf32>
    %269 = arith.mulf %268, %266 : vector<1x32xf32>
    %270 = arith.mulf %261, %249 : vector<1x32xf32>
    %271 = arith.addf %269, %270 : vector<1x32xf32>
    %cst_45 = arith.constant dense<0.000000e+00> : vector<1x128xf32>
    %272 = tpu.matmul %271, %203, %cst_45 {dimension_numbers = #tpu.dot_dimension_numbers<[1], [0], [0], [1], [0, 0, 1, 1], [], []>} : vector<1x32xf32>, vector<32x128xf32>, vector<1x128xf32> -> vector<1x128xf32>
    %273 = arith.addf %272, %204 : vector<1x128xf32>
    %274 = vector.extract_strided_slice %201 {offsets = [3, 0], sizes = [1, 128], strides = [1, 1]} : vector<8x128xf32> to vector<1x128xf32>
    %275 = arith.addf %274, %273 : vector<1x128xf32>
    %276 = vector.extract_strided_slice %275 {offsets = [0, 0], sizes = [1, 64], strides = [1, 1]} : vector<1x128xf32> to vector<1x64xf32>
    %277 = arith.negf %276 : vector<1x64xf32>
    %278 = math.exp %277 : vector<1x64xf32>
    %cst_46 = arith.constant 1.000000e+00 : f32
    %279 = vector.broadcast %cst_46 : f32 to vector<1x64xf32>
    %280 = arith.addf %279, %278 : vector<1x64xf32>
    %281 = arith.divf %279, %280 : vector<1x64xf32>
    %282 = vector.extract_strided_slice %281 {offsets = [0, 0], sizes = [1, 32], strides = [1, 1]} : vector<1x64xf32> to vector<1x32xf32>
    %283 = vector.extract_strided_slice %281 {offsets = [0, 32], sizes = [1, 32], strides = [1, 1]} : vector<1x64xf32> to vector<1x32xf32>
    %284 = vector.extract_strided_slice %202 {offsets = [3, 0], sizes = [1, 32], strides = [1, 1]} : vector<8x32xf32> to vector<1x32xf32>
    %285 = vector.extract_strided_slice %273 {offsets = [0, 64], sizes = [1, 32], strides = [1, 1]} : vector<1x128xf32> to vector<1x32xf32>
    %286 = arith.mulf %282, %285 : vector<1x32xf32>
    %287 = arith.addf %284, %286 : vector<1x32xf32>
    %288 = math.tanh %287 : vector<1x32xf32>
    %cst_47 = arith.constant 1.000000e+00 : f32
    %289 = vector.broadcast %cst_47 : f32 to vector<1x32xf32>
    %290 = arith.subf %289, %283 : vector<1x32xf32>
    %291 = arith.mulf %290, %288 : vector<1x32xf32>
    %292 = arith.mulf %283, %271 : vector<1x32xf32>
    %293 = arith.addf %291, %292 : vector<1x32xf32>
    %cst_48 = arith.constant dense<0.000000e+00> : vector<1x128xf32>
    %294 = tpu.matmul %293, %203, %cst_48 {dimension_numbers = #tpu.dot_dimension_numbers<[1], [0], [0], [1], [0, 0, 1, 1], [], []>} : vector<1x32xf32>, vector<32x128xf32>, vector<1x128xf32> -> vector<1x128xf32>
    %295 = arith.addf %294, %204 : vector<1x128xf32>
    %296 = vector.extract_strided_slice %201 {offsets = [4, 0], sizes = [1, 128], strides = [1, 1]} : vector<8x128xf32> to vector<1x128xf32>
    %297 = arith.addf %296, %295 : vector<1x128xf32>
    %298 = vector.extract_strided_slice %297 {offsets = [0, 0], sizes = [1, 64], strides = [1, 1]} : vector<1x128xf32> to vector<1x64xf32>
    %299 = arith.negf %298 : vector<1x64xf32>
    %300 = math.exp %299 : vector<1x64xf32>
    %cst_49 = arith.constant 1.000000e+00 : f32
    %301 = vector.broadcast %cst_49 : f32 to vector<1x64xf32>
    %302 = arith.addf %301, %300 : vector<1x64xf32>
    %303 = arith.divf %301, %302 : vector<1x64xf32>
    %304 = vector.extract_strided_slice %303 {offsets = [0, 0], sizes = [1, 32], strides = [1, 1]} : vector<1x64xf32> to vector<1x32xf32>
    %305 = vector.extract_strided_slice %303 {offsets = [0, 32], sizes = [1, 32], strides = [1, 1]} : vector<1x64xf32> to vector<1x32xf32>
    %306 = vector.extract_strided_slice %202 {offsets = [4, 0], sizes = [1, 32], strides = [1, 1]} : vector<8x32xf32> to vector<1x32xf32>
    %307 = vector.extract_strided_slice %295 {offsets = [0, 64], sizes = [1, 32], strides = [1, 1]} : vector<1x128xf32> to vector<1x32xf32>
    %308 = arith.mulf %304, %307 : vector<1x32xf32>
    %309 = arith.addf %306, %308 : vector<1x32xf32>
    %310 = math.tanh %309 : vector<1x32xf32>
    %cst_50 = arith.constant 1.000000e+00 : f32
    %311 = vector.broadcast %cst_50 : f32 to vector<1x32xf32>
    %312 = arith.subf %311, %305 : vector<1x32xf32>
    %313 = arith.mulf %312, %310 : vector<1x32xf32>
    %314 = arith.mulf %305, %293 : vector<1x32xf32>
    %315 = arith.addf %313, %314 : vector<1x32xf32>
    %cst_51 = arith.constant dense<0.000000e+00> : vector<1x128xf32>
    %316 = tpu.matmul %315, %203, %cst_51 {dimension_numbers = #tpu.dot_dimension_numbers<[1], [0], [0], [1], [0, 0, 1, 1], [], []>} : vector<1x32xf32>, vector<32x128xf32>, vector<1x128xf32> -> vector<1x128xf32>
    %317 = arith.addf %316, %204 : vector<1x128xf32>
    %318 = vector.extract_strided_slice %201 {offsets = [5, 0], sizes = [1, 128], strides = [1, 1]} : vector<8x128xf32> to vector<1x128xf32>
    %319 = arith.addf %318, %317 : vector<1x128xf32>
    %320 = vector.extract_strided_slice %319 {offsets = [0, 0], sizes = [1, 64], strides = [1, 1]} : vector<1x128xf32> to vector<1x64xf32>
    %321 = arith.negf %320 : vector<1x64xf32>
    %322 = math.exp %321 : vector<1x64xf32>
    %cst_52 = arith.constant 1.000000e+00 : f32
    %323 = vector.broadcast %cst_52 : f32 to vector<1x64xf32>
    %324 = arith.addf %323, %322 : vector<1x64xf32>
    %325 = arith.divf %323, %324 : vector<1x64xf32>
    %326 = vector.extract_strided_slice %325 {offsets = [0, 0], sizes = [1, 32], strides = [1, 1]} : vector<1x64xf32> to vector<1x32xf32>
    %327 = vector.extract_strided_slice %325 {offsets = [0, 32], sizes = [1, 32], strides = [1, 1]} : vector<1x64xf32> to vector<1x32xf32>
    %328 = vector.extract_strided_slice %202 {offsets = [5, 0], sizes = [1, 32], strides = [1, 1]} : vector<8x32xf32> to vector<1x32xf32>
    %329 = vector.extract_strided_slice %317 {offsets = [0, 64], sizes = [1, 32], strides = [1, 1]} : vector<1x128xf32> to vector<1x32xf32>
    %330 = arith.mulf %326, %329 : vector<1x32xf32>
    %331 = arith.addf %328, %330 : vector<1x32xf32>
    %332 = math.tanh %331 : vector<1x32xf32>
    %cst_53 = arith.constant 1.000000e+00 : f32
    %333 = vector.broadcast %cst_53 : f32 to vector<1x32xf32>
    %334 = arith.subf %333, %327 : vector<1x32xf32>
    %335 = arith.mulf %334, %332 : vector<1x32xf32>
    %336 = arith.mulf %327, %315 : vector<1x32xf32>
    %337 = arith.addf %335, %336 : vector<1x32xf32>
    %cst_54 = arith.constant dense<0.000000e+00> : vector<1x128xf32>
    %338 = tpu.matmul %337, %203, %cst_54 {dimension_numbers = #tpu.dot_dimension_numbers<[1], [0], [0], [1], [0, 0, 1, 1], [], []>} : vector<1x32xf32>, vector<32x128xf32>, vector<1x128xf32> -> vector<1x128xf32>
    %339 = arith.addf %338, %204 : vector<1x128xf32>
    %340 = vector.extract_strided_slice %201 {offsets = [6, 0], sizes = [1, 128], strides = [1, 1]} : vector<8x128xf32> to vector<1x128xf32>
    %341 = arith.addf %340, %339 : vector<1x128xf32>
    %342 = vector.extract_strided_slice %341 {offsets = [0, 0], sizes = [1, 64], strides = [1, 1]} : vector<1x128xf32> to vector<1x64xf32>
    %343 = arith.negf %342 : vector<1x64xf32>
    %344 = math.exp %343 : vector<1x64xf32>
    %cst_55 = arith.constant 1.000000e+00 : f32
    %345 = vector.broadcast %cst_55 : f32 to vector<1x64xf32>
    %346 = arith.addf %345, %344 : vector<1x64xf32>
    %347 = arith.divf %345, %346 : vector<1x64xf32>
    %348 = vector.extract_strided_slice %347 {offsets = [0, 0], sizes = [1, 32], strides = [1, 1]} : vector<1x64xf32> to vector<1x32xf32>
    %349 = vector.extract_strided_slice %347 {offsets = [0, 32], sizes = [1, 32], strides = [1, 1]} : vector<1x64xf32> to vector<1x32xf32>
    %350 = vector.extract_strided_slice %202 {offsets = [6, 0], sizes = [1, 32], strides = [1, 1]} : vector<8x32xf32> to vector<1x32xf32>
    %351 = vector.extract_strided_slice %339 {offsets = [0, 64], sizes = [1, 32], strides = [1, 1]} : vector<1x128xf32> to vector<1x32xf32>
    %352 = arith.mulf %348, %351 : vector<1x32xf32>
    %353 = arith.addf %350, %352 : vector<1x32xf32>
    %354 = math.tanh %353 : vector<1x32xf32>
    %cst_56 = arith.constant 1.000000e+00 : f32
    %355 = vector.broadcast %cst_56 : f32 to vector<1x32xf32>
    %356 = arith.subf %355, %349 : vector<1x32xf32>
    %357 = arith.mulf %356, %354 : vector<1x32xf32>
    %358 = arith.mulf %349, %337 : vector<1x32xf32>
    %359 = arith.addf %357, %358 : vector<1x32xf32>
    %cst_57 = arith.constant dense<0.000000e+00> : vector<1x128xf32>
    %360 = tpu.matmul %359, %203, %cst_57 {dimension_numbers = #tpu.dot_dimension_numbers<[1], [0], [0], [1], [0, 0, 1, 1], [], []>} : vector<1x32xf32>, vector<32x128xf32>, vector<1x128xf32> -> vector<1x128xf32>
    %361 = arith.addf %360, %204 : vector<1x128xf32>
    %362 = vector.extract_strided_slice %201 {offsets = [7, 0], sizes = [1, 128], strides = [1, 1]} : vector<8x128xf32> to vector<1x128xf32>
    %363 = arith.addf %362, %361 : vector<1x128xf32>
    %364 = vector.extract_strided_slice %363 {offsets = [0, 0], sizes = [1, 64], strides = [1, 1]} : vector<1x128xf32> to vector<1x64xf32>
    %365 = arith.negf %364 : vector<1x64xf32>
    %366 = math.exp %365 : vector<1x64xf32>
    %cst_58 = arith.constant 1.000000e+00 : f32
    %367 = vector.broadcast %cst_58 : f32 to vector<1x64xf32>
    %368 = arith.addf %367, %366 : vector<1x64xf32>
    %369 = arith.divf %367, %368 : vector<1x64xf32>
    %370 = vector.extract_strided_slice %369 {offsets = [0, 0], sizes = [1, 32], strides = [1, 1]} : vector<1x64xf32> to vector<1x32xf32>
    %371 = vector.extract_strided_slice %369 {offsets = [0, 32], sizes = [1, 32], strides = [1, 1]} : vector<1x64xf32> to vector<1x32xf32>
    %372 = vector.extract_strided_slice %202 {offsets = [7, 0], sizes = [1, 32], strides = [1, 1]} : vector<8x32xf32> to vector<1x32xf32>
    %373 = vector.extract_strided_slice %361 {offsets = [0, 64], sizes = [1, 32], strides = [1, 1]} : vector<1x128xf32> to vector<1x32xf32>
    %374 = arith.mulf %370, %373 : vector<1x32xf32>
    %375 = arith.addf %372, %374 : vector<1x32xf32>
    %376 = math.tanh %375 : vector<1x32xf32>
    %cst_59 = arith.constant 1.000000e+00 : f32
    %377 = vector.broadcast %cst_59 : f32 to vector<1x32xf32>
    %378 = arith.subf %377, %371 : vector<1x32xf32>
    %379 = arith.mulf %378, %376 : vector<1x32xf32>
    %380 = arith.mulf %371, %359 : vector<1x32xf32>
    %381 = arith.addf %379, %380 : vector<1x32xf32>
    %c168 = arith.constant 168 : index
    %c0_60 = arith.constant 0 : index
    %382 = vector.load %arg2[%c168, %c0_60] : memref<376x128xf32, #tpu.memory_space<vmem>>, vector<32x128xf32>
    %cst_61 = arith.constant dense<0.000000e+00> : vector<1x128xf32>
    %383 = tpu.matmul %381, %382, %cst_61 {dimension_numbers = #tpu.dot_dimension_numbers<[1], [0], [0], [1], [0, 0, 1, 1], [], []>} : vector<1x32xf32>, vector<32x128xf32>, vector<1x128xf32> -> vector<1x128xf32>
    %c200 = arith.constant 200 : index
    %c0_62 = arith.constant 0 : index
    %384 = vector.load %arg2[%c200, %c0_62] : memref<376x128xf32, #tpu.memory_space<vmem>>, vector<1x128xf32>
    %385 = arith.addf %383, %384 : vector<1x128xf32>
    %c136 = arith.constant 136 : index
    %c0_63 = arith.constant 0 : index
    %386 = vector.load %arg2[%c136, %c0_63] : memref<376x128xf32, #tpu.memory_space<vmem>>, vector<32x128xf32>
    %cst_64 = arith.constant dense<0.000000e+00> : vector<8x128xf32>
    %387 = tpu.matmul %196, %386, %cst_64 {dimension_numbers = #tpu.dot_dimension_numbers<[1], [0], [0], [1], [0, 0, 1, 1], [], []>} : vector<8x32xf32>, vector<32x128xf32>, vector<8x128xf32> -> vector<8x128xf32>
    %388 = vector.broadcast %385 : vector<1x128xf32> to vector<8x128xf32>
    %389 = arith.addf %387, %388 : vector<8x128xf32>
    %cst_65 = arith.constant 0.000000e+00 : f32
    %390 = vector.broadcast %cst_65 : f32 to vector<8x128xf32>
    %391 = arith.maximumf %389, %390 : vector<8x128xf32>
    %c208 = arith.constant 208 : index
    %c0_66 = arith.constant 0 : index
    %392 = vector.load %arg2[%c208, %c0_66] : memref<376x128xf32, #tpu.memory_space<vmem>>, vector<128x128xf32>
    %cst_67 = arith.constant dense<0.000000e+00> : vector<8x128xf32>
    %393 = tpu.matmul %391, %392, %cst_67 {dimension_numbers = #tpu.dot_dimension_numbers<[1], [0], [0], [1], [0, 0, 1, 1], [], []>} : vector<8x128xf32>, vector<128x128xf32>, vector<8x128xf32> -> vector<8x128xf32>
    %c336 = arith.constant 336 : index
    %c0_68 = arith.constant 0 : index
    %394 = vector.load %arg2[%c336, %c0_68] : memref<376x128xf32, #tpu.memory_space<vmem>>, vector<1x128xf32>
    %395 = vector.broadcast %394 : vector<1x128xf32> to vector<8x128xf32>
    %396 = arith.addf %393, %395 : vector<8x128xf32>
    %cst_69 = arith.constant 0.000000e+00 : f32
    %397 = vector.broadcast %cst_69 : f32 to vector<8x128xf32>
    %398 = arith.maximumf %396, %397 : vector<8x128xf32>
    %c344 = arith.constant 344 : index
    %c0_70 = arith.constant 0 : index
    %399 = vector.load %arg2[%c344, %c0_70] : memref<376x128xf32, #tpu.memory_space<vmem>>, vector<1x128xf32>
    %400 = vector.broadcast %399 : vector<1x128xf32> to vector<8x128xf32>
    %401 = arith.mulf %398, %400 : vector<8x128xf32>
    %cst_71 = arith.constant dense<0.000000e+00> : vector<8xf32>
    %402 = vector.multi_reduction <add>, %401, %cst_71 [1] : vector<8x128xf32> to vector<8xf32>
    %403 = vector.shape_cast %402 : vector<8xf32> to vector<8x1xf32>
    %c360 = arith.constant 360 : index
    %c0_72 = arith.constant 0 : index
    %404 = vector.load %arg2[%c360, %c0_72] : memref<376x128xf32, #tpu.memory_space<vmem>>, vector<1x1xf32>
    %405 = vector.broadcast %404 : vector<1x1xf32> to vector<8x1xf32>
    %406 = arith.addf %403, %405 : vector<8x1xf32>
    %c352 = arith.constant 352 : index
    %c0_73 = arith.constant 0 : index
    %407 = vector.load %arg2[%c352, %c0_73] : memref<376x128xf32, #tpu.memory_space<vmem>>, vector<1x128xf32>
    %cst_74 = arith.constant dense<0.000000e+00> : vector<1x8xf32>
    %408 = tpu.matmul %407, %398, %cst_74 {dimension_numbers = #tpu.dot_dimension_numbers<[1], [1], [0], [0], [0, 0, 1, 0], [], []>} : vector<1x128xf32>, vector<8x128xf32>, vector<1x8xf32> -> vector<1x8xf32>
    %c368 = arith.constant 368 : index
    %c0_75 = arith.constant 0 : index
    %409 = vector.load %arg2[%c368, %c0_75] : memref<376x128xf32, #tpu.memory_space<vmem>>, vector<1x1xf32>
    %410 = vector.broadcast %409 : vector<1x1xf32> to vector<1x8xf32>
    %411 = arith.addf %408, %410 : vector<1x8xf32>
    %412 = tpu.reciprocal %406 : vector<8x1xf32> -> vector<8x1xf32>
    %413 = vector.broadcast %411 : vector<1x8xf32> to vector<8x8xf32>
    %414 = vector.broadcast %412 : vector<8x1xf32> to vector<8x8xf32>
    %415 = arith.mulf %413, %414 : vector<8x8xf32>
    %cst_76 = arith.constant dense<0xFF800000> : vector<8xf32>
    %416 = vector.multi_reduction <maximumf>, %415, %cst_76 [1] : vector<8x8xf32> to vector<8xf32>
    %417 = vector.shape_cast %416 : vector<8xf32> to vector<8x1xf32>
    %418 = vector.broadcast %417 : vector<8x1xf32> to vector<8x8xf32>
    %419 = arith.subf %415, %418 : vector<8x8xf32>
    %420 = math.exp %419 : vector<8x8xf32>
    %cst_77 = arith.constant dense<0.000000e+00> : vector<8xf32>
    %421 = vector.multi_reduction <add>, %420, %cst_77 [1] : vector<8x8xf32> to vector<8xf32>
    %422 = vector.shape_cast %421 : vector<8xf32> to vector<8x1xf32>
    %423 = tpu.reciprocal %422 {approx = true} : vector<8x1xf32> -> vector<8x1xf32>
    %424 = vector.broadcast %423 : vector<8x1xf32> to vector<8x8xf32>
    %425 = arith.mulf %420, %424 : vector<8x8xf32>
    %c0_78 = arith.constant 0 : index
    %c0_79 = arith.constant 0 : index
    %426 = vector.load %arg3[%c0_78, %c0_79] : memref<8x8xf32, #tpu.memory_space<vmem>>, vector<8x8xf32>
    tpu.vector_store %arg3[%c0_78, %c0_79], %425 {strides = array<i32>} : memref<8x8xf32, #tpu.memory_space<vmem>>, vector<8x8xf32>,
    return
  }
  func.func @transform_0(%arg0: i32) -> (i32, i32) {
    %c0_i32 = arith.constant 0 : i32
    %c0_i32_0 = arith.constant 0 : i32
    %c0_i32_1 = arith.constant 0 : i32
    return %c0_i32, %c0_i32_0 : i32, i32
  }
  func.func @transform_1(%arg0: i32) -> (i32, i32) {
    %c0_i32 = arith.constant 0 : i32
    %c0_i32_0 = arith.constant 0 : i32
    %c0_i32_1 = arith.constant 0 : i32
    return %c0_i32, %c0_i32_0 : i32, i32
  }
  func.func @transform_2(%arg0: i32) -> (i32, i32) {
    %c0_i32 = arith.constant 0 : i32
    %c0_i32_0 = arith.constant 0 : i32
    %c0_i32_1 = arith.constant 0 : i32
    return %c0_i32, %c0_i32_0 : i32, i32
  }
}

</mosaic_0001>

<bundles_post_ra>
// kernel: meta_solver_forward.1
= control target key start
LH: loop header
LB: loop body
LE: loop exit
PB: predicated region body
PF: predicated region fallthrough
CT: control target
= control target key end

     0   :  { %7 = vsyncpa [#allocation3], 0  ;;  %s3280_s0 = inlined_call_operand.vmem [shape: f32[64,1], index: 0, kind: input, shape index: {}]   ;;  %s3281_s1 = inlined_call_operand.hbm [shape: f32[376,128], index: 1, kind: input, shape index: {}]   ;;  %s3282_s2 = inlined_call_operand.hbm [shape: f32[8,8], index: 2, kind: output, shape index: {}]  }
   0x1   :  { %8 = vsyncpa [#allocation4], 0  ;;  %s2927_s9 = smov [#allocation2]   ;;  %s2879_s13 = scalar_lea.hbm %s3281_s1, 6016 }
   0x2   :  { %s16_s10 = sshll.u32 %s2927_s9, 4  ;;  %p2880_p0 = scmp.ne.s32.totalorder %s3281_s1, %s2879_s13  ;;  %s17_s10 = int_to_ptr.vmem [resolvable:$true] %s16_s10 }
   0x3   :  { %p2883_p1 = scmp.lt.u32.totalorder %s2879_s13, %s3281_s1 }
   0x5   :  { %p2885_p2 = pnand %p2883_p1, %p2880_p0 }
   0x7   :  { %2888 = shalt.err (!%p2885_p2)
}
   0x8   :  { %s2889_s18 = scalar_lea.vmem %s17_s10, 6016  ;;  %p2894_p4 = scmp.lt.s32.totalorder %s17_s10, %s17_s10 }
   0x9   :  { %p2890_p3 = scmp.ne.s32.totalorder %s17_s10, %s2889_s18  ;;  %p2895_p5 = scmp.lt.s32.totalorder %s2889_s18, %s2889_s18 }
   0xb   :  { %p2896_p6 = por %p2895_p5, %p2894_p4 }
   0xd   :  { %p2897_p7 = pnand %p2896_p6, %p2890_p3 }
   0xf   :  { %2900 = shalt.err (!%p2897_p7)
}
  0x10   :  { %s2928_s19 = smov 128   ;;  %s2929_s20 = smov 8  }
  0x11   :  { %22 = dma.hbm_to_vmem [thread:$0]  %s3281_s1, 6016, %s17_s10, [#allocation3], %s2928_s19, %s2928_s19, %s2929_s20  }
  0x12   :  { %2923 = dma.done.wait [#allocation3], 6016  }
  0x13   :  { %2924 = vsyncadd [#allocation3], 4294961280  ;;  %v2930_v0 = vmov 0.0|0.0   ;;  %vm2931_vm0 = vmmov 0   ;;  %v2932_v1 = vmov 0.0   ;;  %v2933_v2 = vmov 0  }
  0x14   :  { %2627 = vmatprep.subr.bf16.mxu0 %v2930_v0  ;;  %2386 = vmatprep.mubr.msk.f32.mxu0 %vm2931_vm0, %v2932_v1  ;;  %v100_v3 = vld [vmem:[#allocation2 + $0x10] sm:$0xff]  ;;  %v101_v4 = vld [vmem:[#allocation2 + $0x18] sm:$0xff]  ;;  %v102_v5 = vld [vmem:[#allocation2 + $0x20] sm:$0xff]  ;;  %s2934_s24 = smov 64   ;;  %s2935_s25 = smov 96   ;;  %vm109_vm1 = vcmask 261120  }
  0x15   :  { %2775 = vset.pattern.permute.xlu0 %v2933_v2  ;;  %2776 = vset.pattern.permute.xlu1 %v2933_v2  ;;  %v2970_v6 = vpack.c.bf16 %v101_v4, %v100_v3  ;;  %v103_v7 = vld [vmem:[#allocation2 + $0x28] sm:$0xff]  ;;  %v26_v8 = vld [vmem:[%s3280_s0] sm:$0xff]  ;;  %v2992_v10 = vld [vmem:[#allocation2 + $0x30] ss:$0 sm:$0xff]  ;;  %vm2196_vm2 = vcmask 64512  }
  0x16   :  { %2645 = vmatprep.subr.bf16.mxu1 %v2930_v0  ;;  %2419 = vmatprep.mubr.msk.f32.mxu1 %vm2931_vm0, %v2932_v1  ;;  %v2976_v9 = vpack.c.bf16 %v103_v7, %v102_v5  ;;  %v2996_v14 = vld [vmem:[#allocation2] ss:$0 sm:$0xff]  ;;  %v2999_v17 = vld [vmem:[#allocation2 + $0x8] ss:$0 sm:$0xff]  ;;  %v28_v52 = vld [vmem:[%s3280_s0 + $0x10] sm:$0xff] }
  0x17   :  { %36 = vperm.xlu0 %2775, %v26_v8   ;;  %2629 = vmatpush3.bf16.msra.mxu0 %v2970_v6  ;;  %v27_v29 = vld [vmem:[%s3280_s0 + $0x8] sm:$0xff] }
  0x18   :  { %2647 = vmatpush3.bf16.msra.mxu1 %v2970_v6  ;;  %2630 = vmatprep.subr.bf16.mxu0 %v2930_v0 }
  0x19   :  { %2648 = vmatprep.subr.bf16.mxu1 %v2930_v0 }
  0x1b   :  { %2632 = vmatpush3.bf16.msra.mxu0 %v2976_v9 }
  0x1c   :  { %2650 = vmatpush3.bf16.msra.mxu1 %v2976_v9  ;;  %2633 = vmatprep.subr.bf16.mxu0 %v2930_v0 }
  0x1d   :  { %2657 = vmatprep.subr.bf16.mxu1 %v2930_v0 }
  0x1e   :  { %2387 = vmatmul.mubr.f32.vlgmr.msra.gmra.mrb[0].mxu0 %v2932_v1 }
  0x1f   :  { %2635 = vmatpush3.bf16.msra.mxu0 %v2970_v6  ;;  %2397 = vmatprep.mubr.msk.f32.mxu0 %vm2931_vm0, %v2932_v1 }
  0x20   :  { %2636 = vmatprep.subr.bf16.mxu0 %v2930_v0 }
  0x23   :  { %2638 = vmatpush3.bf16.msra.mxu0 %v2976_v9 }
  0x24   :  { %2639 = vmatprep.subr.bf16.mxu0 %v2930_v0 }
  0x96   :  { %v37_v15 = vpop.permute.xlu0 %36 }
  0x97   :  { %v79_v16 = vmul.f32 %v2996_v14, %v37_v15 }
  0x99   :  { %v92_v18 = vadd.f32 %v2999_v17, %v79_v16 }
  0xf1   :  { %v179_v11 = vpop.f32.mrb[0].mxu0 }
  0xf2   :  { %v180_v12 = vadd.f32 %v2992_v10, %v179_v11  ;;  %v2388_v13 = vpop.f32.mrb[1].mxu0 }
  0xf4   :  { %191 = vrot.lane.b32.xlu0 %v180_v12, %s2934_s24  ;;  %v183_v19 = vadd.f32 %v180_v12, %v92_v18 }
  0xf6   :  { %v2227_v20 = vmul.f32 -1.442695, %v183_v19 }
  0xf8   :  { %2777 = vpow2.f32 %v2227_v20 }
 0x102   :  { %v2778_v21 = vpop.eup %2777 }
 0x103   :  { %v187_v22 = vadd.f32 1.0, %v2778_v21 }
 0x105   :  { %2779 = vrcp.f32 %v187_v22 }
 0x10f   :  { %v2780_v23 = vpop.eup %2779 }
 0x110   :  { %v201_v30 = vsub.f32 1.0, %v2780_v23  ;;  %v207_v32 = vmul.f32 0.0, %v2780_v23 }
 0x166   :  { %v192_v24 = vpop.permute.xlu0 %191 }
 0x167   :  { %v194_v25 = vmul.f32 %v2780_v23, %v192_v24 }
 0x169   :  { %196 = vrot.lane.b32.xlu1 %v194_v25, %s2934_s24 }
 0x1db   :  { %v197_v26 = vpop.permute.xlu1 %196 }
 0x1dc   :  { %v199_v27 = vadd.f32 %v197_v26, %v92_v18  ;;  %v29_v18 = vld [vmem:[%s3280_s0 + $0x18] sm:$0xff] }
 0x1de   :  { %2781 = vtanh.f32 %v199_v27 }
 0x1e8   :  { %v2782_v28 = vpop.eup %2781 }
 0x1e9   :  { %203 = vrot.lane.b32.xlu1 %v2782_v28, %s2935_s25 }
 0x1ed   :  { %41 = vperm.xlu1 %2776, %v27_v29  }
 0x25b   :  { %v204_v31 = vpop.permute.xlu1 %203 }
 0x25c   :  { %v206_v33 = vmul.f32 %v204_v31, %v201_v30 }
 0x25e   :  { %v208_v34 = vadd.f32 %v207_v32, %v206_v33 }
 0x260   :  { %210 = vrot.lane.b32.xlu0 %v208_v34, %s2935_s25 }
 0x26c   :  { %v42_v39 = vpop.permute.xlu1 %41 }
 0x26d   :  { %v80_v40 = vmul.f32 %v2996_v14, %v42_v39 }
 0x26f   :  { %v93_v41 = vadd.f32 %v2999_v17, %v80_v40 }
 0x2d2   :  { %v211_v35 = vpop.permute.xlu0 %210 }
 0x2d3   :  { %2398 = vmatmul.mubr.msk.f32.vlgmr.msra.gmra.mrb[2].mxu0 %vm109_vm1, %v211_v35 }
 0x2d4   :  { %2641 = vmatpush3.bf16.msra.mxu0 %v2970_v6  ;;  %2408 = vmatprep.mubr.msk.f32.mxu0 %vm2931_vm0, %v2932_v1 }
 0x2d5   :  { %2642 = vmatprep.subr.bf16.mxu0 %v2930_v0 }
 0x2d8   :  { %2644 = vmatpush3.bf16.msra.mxu0 %v2976_v9 }
 0x2d9   :  { %2651 = vmatprep.subr.bf16.mxu0 %v2930_v0 }
 0x3a6   :  { %v280_v36 = vpop.f32.mrb[2].mxu0 }
 0x3a7   :  { %v281_v37 = vadd.f32 %v2992_v10, %v280_v36  ;;  %v2399_v38 = vpop.f32.mrb[3].mxu0 }
 0x3a9   :  { %292 = vrot.lane.b32.xlu0 %v281_v37, %s2934_s24  ;;  %v284_v42 = vadd.f32 %v281_v37, %v93_v41 }
 0x3ab   :  { %v2229_v43 = vmul.f32 -1.442695, %v284_v42 }
 0x3ad   :  { %2783 = vpow2.f32 %v2229_v43 }
 0x3b7   :  { %v2784_v44 = vpop.eup %2783 }
 0x3b8   :  { %v288_v45 = vadd.f32 1.0, %v2784_v44 }
 0x3ba   :  { %2785 = vrcp.f32 %v288_v45 }
 0x3c4   :  { %v2786_v46 = vpop.eup %2785 }
 0x3c5   :  { %v302_v53 = vsub.f32 1.0, %v2786_v46  ;;  %v308_v55 = vmul.f32 %v2786_v46, %v208_v34 }
 0x41b   :  { %v293_v47 = vpop.permute.xlu0 %292 }
 0x41c   :  { %v295_v48 = vmul.f32 %v2786_v46, %v293_v47 }
 0x41e   :  { %297 = vrot.lane.b32.xlu1 %v295_v48, %s2934_s24 }
 0x490   :  { %v298_v49 = vpop.permute.xlu1 %297 }
 0x491   :  { %v300_v50 = vadd.f32 %v298_v49, %v93_v41  ;;  %v30_v41 = vld [vmem:[%s3280_s0 + $0x20] sm:$0xff] }
 0x493   :  { %2787 = vtanh.f32 %v300_v50 }
 0x49d   :  { %v2788_v51 = vpop.eup %2787 }
 0x49e   :  { %304 = vrot.lane.b32.xlu0 %v2788_v51, %s2935_s25 }
 0x4a2   :  { %46 = vperm.xlu0 %2775, %v28_v52  }
 0x510   :  { %v305_v54 = vpop.permute.xlu0 %304 }
 0x511   :  { %v307_v56 = vmul.f32 %v305_v54, %v302_v53 }
 0x513   :  { %v309_v57 = vadd.f32 %v308_v55, %v307_v56 }
 0x515   :  { %311 = vrot.lane.b32.xlu1 %v309_v57, %s2935_s25 }
 0x521   :  { %v47_v62 = vpop.permute.xlu0 %46 }
 0x522   :  { %v81_v63 = vmul.f32 %v2996_v14, %v47_v62 }
 0x524   :  { %v94_v2 = vadd.f32 %v2999_v17, %v81_v63 }
 0x587   :  { %v312_v58 = vpop.permute.xlu1 %311 }
 0x588   :  { %2409 = vmatmul.mubr.msk.f32.vlgmr.msra.gmra.mrb[4].mxu0 %vm109_vm1, %v312_v58 }
 0x589   :  { %2653 = vmatpush3.bf16.msra.mxu0 %v2970_v6  ;;  %2430 = vmatprep.mubr.msk.f32.mxu0 %vm2931_vm0, %v2932_v1 }
 0x58a   :  { %2654 = vmatprep.subr.bf16.mxu0 %v2930_v0 }
 0x58d   :  { %2656 = vmatpush3.bf16.msra.mxu0 %v2976_v9 }
 0x58e   :  { %2663 = vmatprep.subr.bf16.mxu0 %v2930_v0 }
 0x65b   :  { %v381_v59 = vpop.f32.mrb[4].mxu0 }
 0x65c   :  { %v382_v60 = vadd.f32 %v2992_v10, %v381_v59  ;;  %v2410_v61 = vpop.f32.mrb[5].mxu0 }
 0x65e   :  { %393 = vrot.lane.b32.xlu1 %v382_v60, %s2934_s24  ;;  %v385_v3 = vadd.f32 %v382_v60, %v94_v2 }
 0x660   :  { %v2231_v4 = vmul.f32 -1.442695, %v385_v3 }
 0x662   :  { %2789 = vpow2.f32 %v2231_v4 }
 0x66c   :  { %v2790_v5 = vpop.eup %2789 }
 0x66d   :  { %v389_v7 = vadd.f32 1.0, %v2790_v5 }
 0x66f   :  { %2791 = vrcp.f32 %v389_v7 }
 0x679   :  { %v2792_v8 = vpop.eup %2791 }
 0x67a   :  { %v403_v19 = vsub.f32 1.0, %v2792_v8  ;;  %v409_v21 = vmul.f32 %v2792_v8, %v309_v57 }
 0x6d0   :  { %v394_v11 = vpop.permute.xlu1 %393 }
 0x6d1   :  { %v396_v12 = vmul.f32 %v2792_v8, %v394_v11 }
 0x6d3   :  { %398 = vrot.lane.b32.xlu0 %v396_v12, %s2934_s24 }
 0x745   :  { %v399_v13 = vpop.permute.xlu0 %398 }
 0x746   :  { %v401_v15 = vadd.f32 %v399_v13, %v94_v2  ;;  %v31_v2 = vld [vmem:[%s3280_s0 + $0x28] sm:$0xff] }
 0x748   :  { %2793 = vtanh.f32 %v401_v15 }
 0x752   :  { %v2794_v16 = vpop.eup %2793 }
 0x753   :  { %405 = vrot.lane.b32.xlu1 %v2794_v16, %s2935_s25 }
 0x757   :  { %51 = vperm.xlu1 %2776, %v29_v18  }
 0x7c5   :  { %v406_v20 = vpop.permute.xlu1 %405 }
 0x7c6   :  { %v408_v22 = vmul.f32 %v406_v20, %v403_v19 }
 0x7c8   :  { %v410_v23 = vadd.f32 %v409_v21, %v408_v22 }
 0x7ca   :  { %412 = vrot.lane.b32.xlu0 %v410_v23, %s2935_s25 }
 0x7d6   :  { %v52_v28 = vpop.permute.xlu1 %51 }
 0x7d7   :  { %v82_v29 = vmul.f32 %v2996_v14, %v52_v28  ;;  %v32_v28 = vld [vmem:[%s3280_s0 + $0x30] sm:$0xff] }
 0x7d9   :  { %v95_v30 = vadd.f32 %v2999_v17, %v82_v29 }
 0x83c   :  { %v413_v24 = vpop.permute.xlu0 %412 }
 0x83d   :  { %2420 = vmatmul.mubr.msk.f32.vlgmr.msra.gmra.mrb[0].mxu1 %vm109_vm1, %v413_v24 }
 0x83e   :  { %2659 = vmatpush3.bf16.msra.mxu1 %v2970_v6  ;;  %2441 = vmatprep.mubr.msk.f32.mxu1 %vm2931_vm0, %v2932_v1 }
 0x83f   :  { %2660 = vmatprep.subr.bf16.mxu1 %v2930_v0 }
 0x842   :  { %2662 = vmatpush3.bf16.msra.mxu1 %v2976_v9 }
 0x843   :  { %2669 = vmatprep.subr.bf16.mxu1 %v2930_v0 }
 0x910   :  { %v482_v25 = vpop.f32.mrb[0].mxu1 }
 0x911   :  { %v483_v26 = vadd.f32 %v2992_v10, %v482_v25  ;;  %v2421_v27 = vpop.f32.mrb[1].mxu1 }
 0x913   :  { %494 = vrot.lane.b32.xlu0 %v483_v26, %s2934_s24  ;;  %v486_v31 = vadd.f32 %v483_v26, %v95_v30 }
 0x915   :  { %v2233_v32 = vmul.f32 -1.442695, %v486_v31 }
 0x917   :  { %2795 = vpow2.f32 %v2233_v32 }
 0x921   :  { %v2796_v33 = vpop.eup %2795 }
 0x922   :  { %v490_v34 = vadd.f32 1.0, %v2796_v33 }
 0x924   :  { %2797 = vrcp.f32 %v490_v34 }
 0x92e   :  { %v2798_v35 = vpop.eup %2797 }
 0x92f   :  { %v504_v42 = vsub.f32 1.0, %v2798_v35  ;;  %v510_v44 = vmul.f32 %v2798_v35, %v410_v23 }
 0x985   :  { %v495_v36 = vpop.permute.xlu0 %494 }
 0x986   :  { %v497_v37 = vmul.f32 %v2798_v35, %v495_v36 }
 0x988   :  { %499 = vrot.lane.b32.xlu1 %v497_v37, %s2934_s24 }
 0x9fa   :  { %v500_v38 = vpop.permute.xlu1 %499 }
 0x9fb   :  { %v502_v39 = vadd.f32 %v500_v38, %v95_v30 }
 0x9fd   :  { %2799 = vtanh.f32 %v502_v39 }
 0xa07   :  { %v2800_v40 = vpop.eup %2799 }
 0xa08   :  { %506 = vrot.lane.b32.xlu0 %v2800_v40, %s2935_s25 }
 0xa0c   :  { %56 = vperm.xlu0 %2775, %v30_v41  }
 0xa7a   :  { %v507_v43 = vpop.permute.xlu0 %506 }
 0xa7b   :  { %v509_v45 = vmul.f32 %v507_v43, %v504_v42 }
 0xa7d   :  { %v511_v46 = vadd.f32 %v510_v44, %v509_v45 }
 0xa7f   :  { %513 = vrot.lane.b32.xlu1 %v511_v46, %s2935_s25 }
 0xa8b   :  { %v57_v51 = vpop.permute.xlu0 %56 }
 0xa8c   :  { %v83_v52 = vmul.f32 %v2996_v14, %v57_v51  ;;  %v33_v51 = vld [vmem:[%s3280_s0 + $0x38] sm:$0xff]  ;;  %s2936_s0 = smov [#allocation5]  }
 0xa8d   :  { %s2215_s12 = sshll.u32 %s2936_s0, 4  ;;  %s2216_s12 = int_to_ptr.vmem [resolvable:$true] %s2215_s12 }
 0xa8e   :  { %v96_v53 = vadd.f32 %v2999_v17, %v83_v52  ;;  %s2901_s13 = scalar_lea.vmem %s2216_s12, 128  ;;  %p2906_p9 = scmp.lt.s32.totalorder %s2216_s12, %s2216_s12 }
 0xa8f   :  { %p2902_p8 = scmp.ne.s32.totalorder %s2216_s12, %s2901_s13  ;;  %p2907_p10 = scmp.lt.s32.totalorder %s2901_s13, %s2901_s13 }
 0xa91   :  { %p2908_p11 = por %p2907_p10, %p2906_p9 }
 0xa93   :  { %p2909_p12 = pnand %p2908_p11, %p2902_p8 }
 0xaf1   :  { %v514_v47 = vpop.permute.xlu1 %513 }
 0xaf2   :  { %2431 = vmatmul.mubr.msk.f32.vlgmr.msra.gmra.mrb[6].mxu0 %vm109_vm1, %v514_v47 }
 0xaf3   :  { %2665 = vmatpush3.bf16.msra.mxu0 %v2970_v6  ;;  %2452 = vmatprep.mubr.msk.f32.mxu0 %vm2931_vm0, %v2932_v1 }
 0xaf4   :  { %2666 = vmatprep.subr.bf16.mxu0 %v2930_v0 }
 0xaf7   :  { %2668 = vmatpush3.bf16.msra.mxu0 %v2976_v9 }
 0xaf8   :  { %2675 = vmatprep.subr.bf16.mxu0 %v2930_v0 }
 0xbc5   :  { %v583_v48 = vpop.f32.mrb[6].mxu0 }
 0xbc6   :  { %v584_v49 = vadd.f32 %v2992_v10, %v583_v48  ;;  %v2432_v50 = vpop.f32.mrb[7].mxu0 }
 0xbc8   :  { %595 = vrot.lane.b32.xlu1 %v584_v49, %s2934_s24  ;;  %v587_v54 = vadd.f32 %v584_v49, %v96_v53 }
 0xbca   :  { %v2235_v55 = vmul.f32 -1.442695, %v587_v54 }
 0xbcc   :  { %2801 = vpow2.f32 %v2235_v55 }
 0xbd6   :  { %v2802_v56 = vpop.eup %2801 }
 0xbd7   :  { %v591_v57 = vadd.f32 1.0, %v2802_v56 }
 0xbd9   :  { %2803 = vrcp.f32 %v591_v57 }
 0xbe3   :  { %v2804_v58 = vpop.eup %2803 }
 0xbe4   :  { %v605_v3 = vsub.f32 1.0, %v2804_v58  ;;  %v611_v5 = vmul.f32 %v2804_v58, %v511_v46 }
 0xc3a   :  { %v596_v59 = vpop.permute.xlu1 %595 }
 0xc3b   :  { %v598_v60 = vmul.f32 %v2804_v58, %v596_v59 }
 0xc3d   :  { %600 = vrot.lane.b32.xlu0 %v598_v60, %s2934_s24 }
 0xcaf   :  { %v601_v61 = vpop.permute.xlu0 %600 }
 0xcb0   :  { %v603_v62 = vadd.f32 %v601_v61, %v96_v53 }
 0xcb2   :  { %2805 = vtanh.f32 %v603_v62 }
 0xcbc   :  { %v2806_v63 = vpop.eup %2805 }
 0xcbd   :  { %607 = vrot.lane.b32.xlu1 %v2806_v63, %s2935_s25 }
 0xcc1   :  { %61 = vperm.xlu1 %2776, %v31_v2  }
 0xd2f   :  { %v608_v4 = vpop.permute.xlu1 %607 }
 0xd30   :  { %v610_v7 = vmul.f32 %v608_v4, %v605_v3 }
 0xd32   :  { %v612_v8 = vadd.f32 %v611_v5, %v610_v7 }
 0xd34   :  { %614 = vrot.lane.b32.xlu0 %v612_v8, %s2935_s25 }
 0xd40   :  { %v62_v16 = vpop.permute.xlu1 %61 }
 0xd41   :  { %v84_v18 = vmul.f32 %v2996_v14, %v62_v16  ;;  %v1002_v16 = vld [vmem:[#allocation2 + $0x70] sm:$0xff] }
 0xda6   :  { %v615_v11 = vpop.permute.xlu0 %614 }
 0xda7   :  { %2442 = vmatmul.mubr.msk.f32.vlgmr.msra.gmra.mrb[2].mxu1 %vm109_vm1, %v615_v11 }
 0xda8   :  { %2671 = vmatpush3.bf16.msra.mxu1 %v2970_v6  ;;  %2463 = vmatprep.mubr.msk.f32.mxu1 %vm2931_vm0, %v2932_v1  ;;  %v97_v6 = vadd.f32 %v2999_v17, %v84_v18  ;;  %v916_v18 = vld [vmem:[#allocation2 + $0x38] sm:$0xff] }
 0xda9   :  { %2672 = vmatprep.subr.bf16.mxu1 %v2930_v0 }
 0xdac   :  { %2674 = vmatpush3.bf16.msra.mxu1 %v2976_v9 }
 0xdad   :  { %2681 = vmatprep.subr.bf16.mxu1 %v2930_v0 }
 0xe7a   :  { %v684_v12 = vpop.f32.mrb[2].mxu1 }
 0xe7b   :  { %v685_v13 = vadd.f32 %v2992_v10, %v684_v12  ;;  %v2443_v15 = vpop.f32.mrb[3].mxu1 }
 0xe7c   :  { %v1001_v15 = vld [vmem:[#allocation2 + $0x68] sm:$0xff] }
 0xe7d   :  { %696 = vrot.lane.b32.xlu0 %v685_v13, %s2934_s24  ;;  %v688_v19 = vadd.f32 %v685_v13, %v97_v6  ;;  %v1000_v13 = vld [vmem:[#allocation2 + $0x60] sm:$0xff] }
 0xe7f   :  { %v2237_v20 = vmul.f32 -1.442695, %v688_v19 }
 0xe81   :  { %2807 = vpow2.f32 %v2237_v20  ;;  %v918_v20 = vld [vmem:[#allocation2 + $0x48] sm:$0xff] }
 0xe8b   :  { %v2808_v21 = vpop.eup %2807 }
 0xe8c   :  { %v692_v22 = vadd.f32 1.0, %v2808_v21  ;;  %v919_v21 = vld [vmem:[#allocation2 + $0x50] sm:$0xff] }
 0xe8e   :  { %2809 = vrcp.f32 %v692_v22 }
 0xe98   :  { %v2810_v9 = vpop.eup %2809 }
 0xe99   :  { %v706_v29 = vsub.f32 1.0, %v2810_v9  ;;  %v712_v31 = vmul.f32 %v2810_v9, %v612_v8 }
 0xeef   :  { %v697_v23 = vpop.permute.xlu0 %696 }
 0xef0   :  { %v699_v24 = vmul.f32 %v2810_v9, %v697_v23  ;;  %v2679_v9 = vpack.c.bf16 %v919_v21, %v918_v20 }
 0xef2   :  { %701 = vrot.lane.b32.xlu1 %v699_v24, %s2934_s24 }
 0xf64   :  { %v702_v25 = vpop.permute.xlu1 %701 }
 0xf65   :  { %v704_v26 = vadd.f32 %v702_v25, %v97_v6  ;;  %v917_v6 = vld [vmem:[#allocation2 + $0x40] sm:$0xff] }
 0xf66   :  { %v2676_v19 = vpack.c.bf16 %v917_v6, %v916_v18 }
 0xf67   :  { %2811 = vtanh.f32 %v704_v26 }
 0xf71   :  { %v2812_v27 = vpop.eup %2811 }
 0xf72   :  { %708 = vrot.lane.b32.xlu0 %v2812_v27, %s2935_s25 }
 0xf76   :  { %66 = vperm.xlu0 %2775, %v32_v28  }
 0xfe4   :  { %v709_v30 = vpop.permute.xlu0 %708 }
 0xfe5   :  { %v711_v32 = vmul.f32 %v709_v30, %v706_v29  ;;  %v3133_v29 = vld [vmem:[#allocation2 + $0x80] sm:$0x1] }
 0xfe7   :  { %v713_v33 = vadd.f32 %v712_v31, %v711_v32 }
 0xfe9   :  { %715 = vrot.lane.b32.xlu1 %v713_v33, %s2935_s25 }
 0xff5   :  { %v67_v38 = vpop.permute.xlu0 %66 }
 0xff6   :  { %v85_v39 = vmul.f32 %v2996_v14, %v67_v38 }
 0xff8   :  { %v98_v40 = vadd.f32 %v2999_v17, %v85_v39 }
0x105b   :  { %v716_v34 = vpop.permute.xlu1 %715 }
0x105c   :  { %2453 = vmatmul.mubr.msk.f32.vlgmr.msra.gmra.mrb[8].mxu0 %vm109_vm1, %v716_v34  ;;  %v2242_v34 = vld [vmem:[#allocation2 + $0x58] ss:$0 sm:$0xff] }
0x105d   :  { %2474 = vmatprep.mubr.msk.f32.mxu0 %vm2931_vm0, %v2932_v1  ;;  %2677 = vmatpush3.bf16.msra.mxu0 %v2676_v19 }
0x105e   :  { %2678 = vmatprep.subr.bf16.mxu0 %v2930_v0 }
0x1061   :  { %2680 = vmatpush3.bf16.msra.mxu0 %v2679_v9 }
0x1062   :  { %2687 = vmatprep.subr.bf16.mxu0 %v2930_v0 }
0x112f   :  { %v785_v35 = vpop.f32.mrb[8].mxu0 }
0x1130   :  { %v786_v36 = vadd.f32 %v2992_v10, %v785_v35  ;;  %v2454_v37 = vpop.f32.mrb[9].mxu0 }
0x1132   :  { %797 = vrot.lane.b32.xlu1 %v786_v36, %s2934_s24  ;;  %v789_v41 = vadd.f32 %v786_v36, %v98_v40 }
0x1134   :  { %v2239_v42 = vmul.f32 -1.442695, %v789_v41 }
0x1136   :  { %2813 = vpow2.f32 %v2239_v42 }
0x1140   :  { %v2814_v43 = vpop.eup %2813 }
0x1141   :  { %v793_v44 = vadd.f32 1.0, %v2814_v43 }
0x1143   :  { %2815 = vrcp.f32 %v793_v44 }
0x114d   :  { %v2816_v45 = vpop.eup %2815 }
0x114e   :  { %v807_v52 = vsub.f32 1.0, %v2816_v45  ;;  %v813_v54 = vmul.f32 %v2816_v45, %v713_v33 }
0x11a4   :  { %v798_v46 = vpop.permute.xlu1 %797 }
0x11a5   :  { %v800_v47 = vmul.f32 %v2816_v45, %v798_v46 }
0x11a7   :  { %802 = vrot.lane.b32.xlu0 %v800_v47, %s2934_s24 }
0x1219   :  { %v803_v48 = vpop.permute.xlu0 %802 }
0x121a   :  { %v805_v49 = vadd.f32 %v803_v48, %v98_v40 }
0x121c   :  { %2817 = vtanh.f32 %v805_v49 }
0x1226   :  { %v2818_v50 = vpop.eup %2817 }
0x1227   :  { %809 = vrot.lane.b32.xlu1 %v2818_v50, %s2935_s25 }
0x122b   :  { %71 = vperm.xlu1 %2776, %v33_v51  }
0x1299   :  { %v810_v53 = vpop.permute.xlu1 %809 }
0x129a   :  { %v812_v55 = vmul.f32 %v810_v53, %v807_v52 }
0x129c   :  { %v814_v56 = vadd.f32 %v813_v54, %v812_v55 }
0x129e   :  { %816 = vrot.lane.b32.xlu0 %v814_v56, %s2935_s25 }
0x12aa   :  { %v72_v61 = vpop.permute.xlu1 %71 }
0x12ab   :  { %v86_v62 = vmul.f32 %v2996_v14, %v72_v61  ;;  %v3114_v14 = vpack.c.bf16 %v1001_v15, %v1000_v13 }
0x12ad   :  { %v99_v63 = vadd.f32 %v2999_v17, %v86_v62  ;;  %v1003_v17 = vld [vmem:[#allocation2 + $0x78] sm:$0xff] }
0x12ae   :  { %v3117_v22 = vpack.c.bf16 %v1003_v17, %v1002_v16 }
0x1310   :  { %v817_v57 = vpop.permute.xlu0 %816 }
0x1311   :  { %2464 = vmatmul.mubr.msk.f32.vlgmr.msra.gmra.mrb[4].mxu1 %vm109_vm1, %v817_v57 }
0x1312   :  { %2485 = vmatprep.mubr.msk.f32.mxu1 %vm2931_vm0, %v2932_v1  ;;  %2683 = vmatpush3.bf16.msra.mxu1 %v3114_v14 }
0x1313   :  { %2684 = vmatprep.subr.bf16.mxu1 %v2930_v0 }
0x1316   :  { %2686 = vmatpush3.bf16.msra.mxu1 %v3117_v22 }
0x1317   :  { %2693 = vmatprep.subr.bf16.mxu1 %v2930_v0 }
0x1319   :  { %2486 = vmatmul.mubr.f32.vlgmr.msra.gmra.mrb[6].mxu1 %v2932_v1 }
0x131a   :  { %2695 = vmatpush3.bf16.msra.mxu1 %v3114_v14  ;;  %2507 = vmatprep.mubr.msk.f32.mxu1 %vm2931_vm0, %v2932_v1 }
0x131b   :  { %2696 = vmatprep.subr.bf16.mxu1 %v2930_v0 }
0x131e   :  { %2698 = vmatpush3.bf16.msra.mxu1 %v3117_v22 }
0x131f   :  { %2705 = vmatprep.subr.bf16.mxu1 %v2930_v0 }
0x13e4   :  { %v886_v58 = vpop.f32.mrb[4].mxu1 }
0x13e5   :  { %v887_v59 = vadd.f32 %v2992_v10, %v886_v58  ;;  %v2465_v60 = vpop.f32.mrb[5].mxu1 }
0x13e7   :  { %898 = vrot.lane.b32.xlu0 %v887_v59, %s2934_s24  ;;  %v890_v2 = vadd.f32 %v887_v59, %v99_v63 }
0x13e9   :  { %v2241_v3 = vmul.f32 -1.442695, %v890_v2 }
0x13eb   :  { %2819 = vpow2.f32 %v2241_v3 }
0x13ec   :  { %v1071_v30 = vpop.f32.mrb[6].mxu1 }
0x13ed   :  { %v1072_v31 = vadd.f32 %v1071_v30, %v3133_v29  ;;  %v2487_v32 = vpop.f32.mrb[7].mxu1 }
0x13f5   :  { %v2820_v4 = vpop.eup %2819 }
0x13f6   :  { %v894_v5 = vadd.f32 1.0, %v2820_v4 }
0x13f8   :  { %2821 = vrcp.f32 %v894_v5 }
0x1402   :  { %v2822_v7 = vpop.eup %2821 }
0x1403   :  { %v908_v24 = vsub.f32 1.0, %v2822_v7  ;;  %v914_v26 = vmul.f32 %v2822_v7, %v814_v56 }
0x1459   :  { %v899_v8 = vpop.permute.xlu0 %898 }
0x145a   :  { %v901_v11 = vmul.f32 %v2822_v7, %v899_v8 }
0x145c   :  { %903 = vrot.lane.b32.xlu1 %v901_v11, %s2934_s24 }
0x14ce   :  { %v904_v10 = vpop.permute.xlu1 %903 }
0x14cf   :  { %v906_v12 = vadd.f32 %v904_v10, %v99_v63 }
0x14d1   :  { %2823 = vtanh.f32 %v906_v12 }
0x14db   :  { %v2824_v23 = vpop.eup %2823 }
0x14dc   :  { %910 = vrot.lane.b32.xlu0 %v2824_v23, %s2935_s25 }
0x14e0   :  { %1083 = vrot.lane.b32.xlu0 %v1072_v31, %s2934_s24 }
0x154e   :  { %v911_v25 = vpop.permute.xlu0 %910 }
0x154f   :  { %v913_v27 = vmul.f32 %v911_v25, %v908_v24 }
0x1551   :  { %v915_v28 = vadd.f32 %v914_v26, %v913_v27 }
0x1552   :  { %v1084_v42 = vpop.permute.xlu0 %1083 }
0x1553   :  { %926 = vrot.lane.b32.xlu1 %v915_v28, %s2935_s25 }
0x15c5   :  { %v3137_v33 = vpop.permute.xlu1 %926 }
0x15c6   :  { %2475 = vmatmul.mubr.msk.f32.vlgmr.msra.gmra.mrb[10].mxu0 %vm109_vm1, %v3137_v33 }
0x15c7   :  { %2689 = vmatpush3.bf16.msra.mxu0 %v3114_v14  ;;  %2496 = vmatprep.mubr.msk.f32.mxu0 %vm2931_vm0, %v2932_v1 }
0x15c8   :  { %2690 = vmatprep.subr.bf16.mxu0 %v2930_v0 }
0x15cb   :  { %2692 = vmatpush3.bf16.msra.mxu0 %v3117_v22 }
0x15cc   :  { %2699 = vmatprep.subr.bf16.mxu0 %v2930_v0 }
0x1699   :  { %v996_v35 = vpop.f32.mrb[10].mxu0 }
0x169a   :  { %v3147_v36 = vadd.f32 %v2242_v34, %v996_v35  ;;  %v2476_v37 = vpop.f32.mrb[11].mxu0 }
0x169c   :  { %v1075_v38 = vadd.f32 %v1072_v31, %v3147_v36 }
0x169e   :  { %v2244_v39 = vmul.f32 -1.442695, %v1075_v38 }
0x16a0   :  { %2825 = vpow2.f32 %v2244_v39 }
0x16aa   :  { %v2826_v40 = vpop.eup %2825 }
0x16ab   :  { %v1079_v41 = vadd.f32 1.0, %v2826_v40 }
0x16ad   :  { %2827 = vrcp.f32 %v1079_v41 }
0x16b7   :  { %v2828_v43 = vpop.eup %2827 }
0x16b8   :  { %v1086_v44 = vmul.f32 %v2828_v43, %v1084_v42  ;;  %v1093_v48 = vsub.f32 1.0, %v2828_v43  ;;  %v1099_v50 = vmul.f32 0.0, %v2828_v43 }
0x16ba   :  { %1088 = vrot.lane.b32.xlu1 %v1086_v44, %s2934_s24 }
0x172c   :  { %v1089_v45 = vpop.permute.xlu1 %1088 }
0x172d   :  { %v1091_v46 = vadd.f32 %v1089_v45, %v3147_v36 }
0x172f   :  { %2829 = vtanh.f32 %v1091_v46 }
0x1739   :  { %v2830_v47 = vpop.eup %2829 }
0x173a   :  { %1095 = vrot.lane.b32.xlu0 %v2830_v47, %s2935_s25 }
0x17ac   :  { %v1096_v49 = vpop.permute.xlu0 %1095 }
0x17ad   :  { %v1098_v51 = vmul.f32 %v1096_v49, %v1093_v48 }
0x17af   :  { %v1100_v52 = vadd.f32 %v1099_v50, %v1098_v51 }
0x17b1   :  { %1102 = vrot.lane.b32.xlu1 %v1100_v52, %s2935_s25  ;;  %v1202_v7 = vrot.slane %v1100_v52, 7 }
0x1823   :  { %v1103_v53 = vpop.permute.xlu1 %1102 }
0x1824   :  { %2497 = vmatmul.mubr.msk.f32.vlgmr.msra.gmra.mrb[12].mxu0 %vm109_vm1, %v1103_v53 }
0x1825   :  { %2701 = vmatpush3.bf16.msra.mxu0 %v3114_v14  ;;  %2518 = vmatprep.mubr.msk.f32.mxu0 %vm2931_vm0, %v2932_v1 }
0x1826   :  { %2702 = vmatprep.subr.bf16.mxu0 %v2930_v0 }
0x1829   :  { %2704 = vmatpush3.bf16.msra.mxu0 %v3117_v22 }
0x182a   :  { %2711 = vmatprep.subr.bf16.mxu0 %v2930_v0 }
0x18f7   :  { %v1172_v54 = vpop.f32.mrb[12].mxu0 }
0x18f8   :  { %v1173_v55 = vadd.f32 %v1172_v54, %v3133_v29  ;;  %v2498_v56 = vpop.f32.mrb[13].mxu0 }
0x18fa   :  { %v1177_v57 = vrot.slane %v1173_v55, 7 }
0x18fc   :  { %1186 = vrot.lane.b32.xlu0 %v1177_v57, %s2934_s24  ;;  %v1179_v58 = vadd.f32 %v1177_v57, %v3147_v36 }
0x18fe   :  { %v2246_v59 = vmul.f32 -1.442695, %v1179_v58 }
0x1900   :  { %2831 = vpow2.f32 %v2246_v59 }
0x190a   :  { %v2832_v60 = vpop.eup %2831 }
0x190b   :  { %v1183_v61 = vadd.f32 1.0, %v2832_v60 }
0x190d   :  { %2833 = vrcp.f32 %v1183_v61 }
0x1917   :  { %v2834_v62 = vpop.eup %2833 }
0x1918   :  { %v1196_v8 = vsub.f32 1.0, %v2834_v62  ;;  %v1204_v12 = vmul.f32 %v2834_v62, %v1202_v7 }
0x196e   :  { %v1187_v63 = vpop.permute.xlu0 %1186 }
0x196f   :  { %v1189_v2 = vmul.f32 %v2834_v62, %v1187_v63 }
0x1971   :  { %1191 = vrot.lane.b32.xlu1 %v1189_v2, %s2934_s24 }
0x19e3   :  { %v1192_v3 = vpop.permute.xlu1 %1191 }
0x19e4   :  { %v1194_v4 = vadd.f32 %v1192_v3, %v3147_v36 }
0x19e6   :  { %2835 = vtanh.f32 %v1194_v4 }
0x19f0   :  { %v2836_v5 = vpop.eup %2835 }
0x19f1   :  { %1198 = vrot.lane.b32.xlu0 %v2836_v5, %s2935_s25 }
0x1a63   :  { %v1199_v11 = vpop.permute.xlu0 %1198 }
0x1a64   :  { %v1201_v10 = vmul.f32 %v1199_v11, %v1196_v8 }
0x1a66   :  { %v1205_v13 = vadd.f32 %v1204_v12, %v1201_v10 }
0x1a68   :  { %v1207_v15 = vrot.slane %v1205_v13, 1  ;;  %v1308_v31 = vrot.slane %v1205_v13, 7 }
0x1a6a   :  { %1208 = vrot.lane.b32.xlu1 %v1207_v15, %s2935_s25 }
0x1adc   :  { %v1209_v16 = vpop.permute.xlu1 %1208 }
0x1add   :  { %2508 = vmatmul.mubr.msk.f32.vlgmr.msra.gmra.mrb[8].mxu1 %vm109_vm1, %v1209_v16 }
0x1ade   :  { %2707 = vmatpush3.bf16.msra.mxu1 %v3114_v14  ;;  %2529 = vmatprep.mubr.msk.f32.mxu1 %vm2931_vm0, %v2932_v1 }
0x1adf   :  { %2708 = vmatprep.subr.bf16.mxu1 %v2930_v0 }
0x1ae2   :  { %2710 = vmatpush3.bf16.msra.mxu1 %v3117_v22 }
0x1ae3   :  { %2717 = vmatprep.subr.bf16.mxu1 %v2930_v0 }
0x1bb0   :  { %v1278_v17 = vpop.f32.mrb[8].mxu1 }
0x1bb1   :  { %v1279_v18 = vadd.f32 %v1278_v17, %v3133_v29  ;;  %v2509_v6 = vpop.f32.mrb[9].mxu1 }
0x1bb3   :  { %v1283_v19 = vrot.slane %v1279_v18, 6 }
0x1bb5   :  { %1292 = vrot.lane.b32.xlu0 %v1283_v19, %s2934_s24  ;;  %v1285_v20 = vadd.f32 %v1283_v19, %v3147_v36 }
0x1bb7   :  { %v2248_v21 = vmul.f32 -1.442695, %v1285_v20 }
0x1bb9   :  { %2837 = vpow2.f32 %v2248_v21 }
0x1bc3   :  { %v2838_v9 = vpop.eup %2837 }
0x1bc4   :  { %v1289_v23 = vadd.f32 1.0, %v2838_v9 }
0x1bc6   :  { %2839 = vrcp.f32 %v1289_v23 }
0x1bd0   :  { %v2840_v24 = vpop.eup %2839 }
0x1bd1   :  { %v1302_v32 = vsub.f32 1.0, %v2840_v24  ;;  %v1310_v35 = vmul.f32 %v2840_v24, %v1308_v31 }
0x1c27   :  { %v1293_v25 = vpop.permute.xlu0 %1292 }
0x1c28   :  { %v1295_v26 = vmul.f32 %v2840_v24, %v1293_v25 }
0x1c2a   :  { %1297 = vrot.lane.b32.xlu1 %v1295_v26, %s2934_s24 }
0x1c9c   :  { %v1298_v27 = vpop.permute.xlu1 %1297 }
0x1c9d   :  { %v1300_v28 = vadd.f32 %v1298_v27, %v3147_v36 }
0x1c9f   :  { %2841 = vtanh.f32 %v1300_v28 }
0x1ca9   :  { %v2842_v30 = vpop.eup %2841 }
0x1caa   :  { %1304 = vrot.lane.b32.xlu0 %v2842_v30, %s2935_s25 }
0x1d1c   :  { %v1305_v34 = vpop.permute.xlu0 %1304 }
0x1d1d   :  { %v1307_v37 = vmul.f32 %v1305_v34, %v1302_v32 }
0x1d1f   :  { %v1311_v38 = vadd.f32 %v1310_v35, %v1307_v37 }
0x1d21   :  { %v1313_v39 = vrot.slane %v1311_v38, 2  ;;  %v1414_v55 = vrot.slane %v1311_v38, 7 }
0x1d23   :  { %1314 = vrot.lane.b32.xlu1 %v1313_v39, %s2935_s25 }
0x1d95   :  { %v1315_v40 = vpop.permute.xlu1 %1314 }
0x1d96   :  { %2519 = vmatmul.mubr.msk.f32.vlgmr.msra.gmra.mrb[14].mxu0 %vm109_vm1, %v1315_v40 }
0x1d97   :  { %2713 = vmatpush3.bf16.msra.mxu0 %v3114_v14  ;;  %2540 = vmatprep.mubr.msk.f32.mxu0 %vm2931_vm0, %v2932_v1 }
0x1d98   :  { %2714 = vmatprep.subr.bf16.mxu0 %v2930_v0 }
0x1d9b   :  { %2716 = vmatpush3.bf16.msra.mxu0 %v3117_v22 }
0x1d9c   :  { %2723 = vmatprep.subr.bf16.mxu0 %v2930_v0 }
0x1e69   :  { %v1384_v41 = vpop.f32.mrb[14].mxu0 }
0x1e6a   :  { %v1385_v42 = vadd.f32 %v1384_v41, %v3133_v29  ;;  %v2520_v43 = vpop.f32.mrb[15].mxu0 }
0x1e6c   :  { %v1389_v44 = vrot.slane %v1385_v42, 5 }
0x1e6e   :  { %1398 = vrot.lane.b32.xlu0 %v1389_v44, %s2934_s24  ;;  %v1391_v45 = vadd.f32 %v1389_v44, %v3147_v36 }
0x1e70   :  { %v2250_v46 = vmul.f32 -1.442695, %v1391_v45 }
0x1e72   :  { %2843 = vpow2.f32 %v2250_v46 }
0x1e7c   :  { %v2844_v47 = vpop.eup %2843 }
0x1e7d   :  { %v1395_v48 = vadd.f32 1.0, %v2844_v47 }
0x1e7f   :  { %2845 = vrcp.f32 %v1395_v48 }
0x1e89   :  { %v2846_v49 = vpop.eup %2845 }
0x1e8a   :  { %v1408_v56 = vsub.f32 1.0, %v2846_v49  ;;  %v1416_v58 = vmul.f32 %v2846_v49, %v1414_v55 }
0x1ee0   :  { %v1399_v50 = vpop.permute.xlu0 %1398 }
0x1ee1   :  { %v1401_v51 = vmul.f32 %v2846_v49, %v1399_v50 }
0x1ee3   :  { %1403 = vrot.lane.b32.xlu1 %v1401_v51, %s2934_s24 }
0x1f55   :  { %v1404_v52 = vpop.permute.xlu1 %1403 }
0x1f56   :  { %v1406_v53 = vadd.f32 %v1404_v52, %v3147_v36 }
0x1f58   :  { %2847 = vtanh.f32 %v1406_v53 }
0x1f62   :  { %v2848_v54 = vpop.eup %2847 }
0x1f63   :  { %1410 = vrot.lane.b32.xlu0 %v2848_v54, %s2935_s25 }
0x1fd5   :  { %v1411_v57 = vpop.permute.xlu0 %1410 }
0x1fd6   :  { %v1413_v59 = vmul.f32 %v1411_v57, %v1408_v56 }
0x1fd8   :  { %v1417_v60 = vadd.f32 %v1416_v58, %v1413_v59 }
0x1fda   :  { %v1419_v61 = vrot.slane %v1417_v60, 3  ;;  %v1520_v18 = vrot.slane %v1417_v60, 7 }
0x1fdc   :  { %1420 = vrot.lane.b32.xlu1 %v1419_v61, %s2935_s25 }
0x204e   :  { %v1421_v62 = vpop.permute.xlu1 %1420 }
0x204f   :  { %2530 = vmatmul.mubr.msk.f32.vlgmr.msra.gmra.mrb[10].mxu1 %vm109_vm1, %v1421_v62 }
0x2050   :  { %2719 = vmatpush3.bf16.msra.mxu1 %v3114_v14  ;;  %2551 = vmatprep.mubr.msk.f32.mxu1 %vm2931_vm0, %v2932_v1 }
0x2051   :  { %2720 = vmatprep.subr.bf16.mxu1 %v2930_v0 }
0x2054   :  { %2722 = vmatpush3.bf16.msra.mxu1 %v3117_v22 }
0x2055   :  { %2729 = vmatprep.subr.bf16.mxu1 %v2930_v0 }
0x2122   :  { %v1490_v63 = vpop.f32.mrb[10].mxu1 }
0x2123   :  { %v1491_v2 = vadd.f32 %v1490_v63, %v3133_v29  ;;  %v2531_v3 = vpop.f32.mrb[11].mxu1 }
0x2125   :  { %v1495_v4 = vrot.slane %v1491_v2, 4 }
0x2127   :  { %1504 = vrot.lane.b32.xlu0 %v1495_v4, %s2934_s24  ;;  %v1497_v5 = vadd.f32 %v1495_v4, %v3147_v36 }
0x2129   :  { %v2252_v7 = vmul.f32 -1.442695, %v1497_v5 }
0x212b   :  { %2849 = vpow2.f32 %v2252_v7 }
0x2135   :  { %v2850_v8 = vpop.eup %2849 }
0x2136   :  { %v1501_v11 = vadd.f32 1.0, %v2850_v8  ;;  %v1923_v8 = vld [vmem:[#allocation2 + $0x88] sm:$0xff] }
0x2138   :  { %2851 = vrcp.f32 %v1501_v11  ;;  %v1924_v11 = vld [vmem:[#allocation2 + $0x90] sm:$0xff] }
0x2142   :  { %v2852_v10 = vpop.eup %2851 }
0x2143   :  { %v1514_v6 = vsub.f32 1.0, %v2852_v10  ;;  %v1522_v20 = vmul.f32 %v2852_v10, %v1520_v18 }
0x2199   :  { %v1505_v12 = vpop.permute.xlu0 %1504 }
0x219a   :  { %v1507_v13 = vmul.f32 %v2852_v10, %v1505_v12  ;;  %v2736_v10 = vpack.c.bf16 %v1924_v11, %v1923_v8  ;;  %v1925_v12 = vld [vmem:[#allocation2 + $0x98] sm:$0xff]  ;;  %v1846_v11 = vld [vmem:[#allocation2 + $0xc8] sm:$0x1] }
0x219c   :  { %1509 = vrot.lane.b32.xlu1 %v1507_v13, %s2934_s24  ;;  %v1926_v13 = vld [vmem:[#allocation2 + $0xa0] sm:$0xff] }
0x220e   :  { %v1510_v15 = vpop.permute.xlu1 %1509 }
0x220f   :  { %v1512_v16 = vadd.f32 %v1510_v15, %v3147_v36 }
0x2211   :  { %2853 = vtanh.f32 %v1512_v16  ;;  %v2739_v16 = vpack.c.bf16 %v1926_v13, %v1925_v12 }
0x221b   :  { %v2854_v17 = vpop.eup %2853 }
0x221c   :  { %1516 = vrot.lane.b32.xlu0 %v2854_v17, %s2935_s25 }
0x228e   :  { %v1517_v19 = vpop.permute.xlu0 %1516 }
0x228f   :  { %v1519_v21 = vmul.f32 %v1517_v19, %v1514_v6 }
0x2291   :  { %v1523_v9 = vadd.f32 %v1522_v20, %v1519_v21 }
0x2293   :  { %v1525_v23 = vrot.slane %v1523_v9, 4  ;;  %v1626_v40 = vrot.slane %v1523_v9, 7 }
0x2295   :  { %1526 = vrot.lane.b32.xlu1 %v1525_v23, %s2935_s25 }
0x2307   :  { %v1527_v24 = vpop.permute.xlu1 %1526 }
0x2308   :  { %2541 = vmatmul.mubr.msk.f32.vlgmr.msra.gmra.mrb[16].mxu0 %vm109_vm1, %v1527_v24 }
0x2309   :  { %2725 = vmatpush3.bf16.msra.mxu0 %v3114_v14  ;;  %2562 = vmatprep.mubr.msk.f32.mxu0 %vm2931_vm0, %v2932_v1 }
0x230a   :  { %2726 = vmatprep.subr.bf16.mxu0 %v2930_v0 }
0x230d   :  { %2728 = vmatpush3.bf16.msra.mxu0 %v3117_v22 }
0x230e   :  { %2735 = vmatprep.subr.bf16.mxu0 %v2930_v0 }
0x23db   :  { %v1596_v25 = vpop.f32.mrb[16].mxu0 }
0x23dc   :  { %v1597_v26 = vadd.f32 %v1596_v25, %v3133_v29  ;;  %v2542_v27 = vpop.f32.mrb[17].mxu0 }
0x23de   :  { %v1601_v28 = vrot.slane %v1597_v26, 3 }
0x23e0   :  { %1610 = vrot.lane.b32.xlu0 %v1601_v28, %s2934_s24  ;;  %v1603_v30 = vadd.f32 %v1601_v28, %v3147_v36 }
0x23e2   :  { %v2254_v31 = vmul.f32 -1.442695, %v1603_v30  ;;  %v1842_v30 = vld [vmem:[#allocation2 + $0xa8] sm:$0xff] }
0x23e4   :  { %2855 = vpow2.f32 %v2254_v31  ;;  %v1843_v31 = vld [vmem:[#allocation2 + $0xb0] sm:$0xff] }
0x23ee   :  { %v2856_v14 = vpop.eup %2855 }
0x23ef   :  { %v1607_v32 = vadd.f32 1.0, %v2856_v14  ;;  %v1844_v14 = vld [vmem:[#allocation2 + $0xb8] sm:$0xff] }
0x23f1   :  { %2857 = vrcp.f32 %v1607_v32  ;;  %v2730_v32 = vpack.c.bf16 %v1843_v31, %v1842_v30 }
0x23fb   :  { %v2858_v34 = vpop.eup %2857 }
0x23fc   :  { %v1620_v41 = vsub.f32 1.0, %v2858_v34  ;;  %v1628_v43 = vmul.f32 %v2858_v34, %v1626_v40 }
0x2452   :  { %v1611_v35 = vpop.permute.xlu0 %1610 }
0x2453   :  { %v1613_v37 = vmul.f32 %v2858_v34, %v1611_v35  ;;  %v1845_v34 = vld [vmem:[#allocation2 + $0xc0] sm:$0xff] }
0x2455   :  { %1615 = vrot.lane.b32.xlu1 %v1613_v37, %s2934_s24  ;;  %v2733_v37 = vpack.c.bf16 %v1845_v34, %v1844_v14 }
0x24c7   :  { %v1616_v22 = vpop.permute.xlu1 %1615 }
0x24c8   :  { %v1618_v38 = vadd.f32 %v1616_v22, %v3147_v36 }
0x24ca   :  { %2859 = vtanh.f32 %v1618_v38 }
0x24d4   :  { %v2860_v39 = vpop.eup %2859 }
0x24d5   :  { %1622 = vrot.lane.b32.xlu0 %v2860_v39, %s2935_s25 }
0x2547   :  { %v1623_v42 = vpop.permute.xlu0 %1622 }
0x2548   :  { %v1625_v44 = vmul.f32 %v1623_v42, %v1620_v41 }
0x254a   :  { %v1629_v45 = vadd.f32 %v1628_v43, %v1625_v44  ;;  %v2109_v43 = vld [vmem:[#allocation2 + $0x170] sm:$0x1] }
0x254b   :  { %v2002_v44 = vld [vmem:[#allocation2 + $0xd0] sm:$0xff] }
0x254c   :  { %v1631_v46 = vrot.slane %v1629_v45, 5  ;;  %v1732_v62 = vrot.slane %v1629_v45, 7  ;;  %v2003_v45 = vld [vmem:[#allocation2 + $0xd8] sm:$0xff] }
0x254e   :  { %1632 = vrot.lane.b32.xlu1 %v1631_v46, %s2935_s25  ;;  %v2742_v46 = vpack.c.bf16 %v2003_v45, %v2002_v44 }
0x25c0   :  { %v1633_v47 = vpop.permute.xlu1 %1632 }
0x25c1   :  { %2552 = vmatmul.mubr.msk.f32.vlgmr.msra.gmra.mrb[12].mxu1 %vm109_vm1, %v1633_v47  ;;  %v2004_v47 = vld [vmem:[#allocation2 + $0xe0] sm:$0xff] }
0x25c2   :  { %2573 = vmatprep.mubr.msk.f32.mxu1 %vm2931_vm0, %v2932_v1  ;;  %2731 = vmatpush3.bf16.msra.mxu1 %v2730_v32 }
0x25c3   :  { %2732 = vmatprep.subr.bf16.mxu1 %v2930_v0 }
0x25c6   :  { %2734 = vmatpush3.bf16.msra.mxu1 %v2733_v37 }
0x25c7   :  { %2741 = vmatprep.subr.bf16.mxu1 %v2930_v0 }
0x2694   :  { %v1702_v48 = vpop.f32.mrb[12].mxu1 }
0x2695   :  { %v1703_v49 = vadd.f32 %v1702_v48, %v3133_v29  ;;  %v2553_v50 = vpop.f32.mrb[13].mxu1  ;;  %v2005_v48 = vld [vmem:[#allocation2 + $0xe8] sm:$0xff] }
0x2696   :  { %v2745_v50 = vpack.c.bf16 %v2005_v48, %v2004_v47 }
0x2697   :  { %v1707_v51 = vrot.slane %v1703_v49, 2 }
0x2699   :  { %1716 = vrot.lane.b32.xlu0 %v1707_v51, %s2934_s24  ;;  %v1709_v52 = vadd.f32 %v1707_v51, %v3147_v36  ;;  %v2006_v51 = vld [vmem:[#allocation2 + $0xf0] sm:$0xff] }
0x269b   :  { %v2256_v53 = vmul.f32 -1.442695, %v1709_v52  ;;  %v2007_v52 = vld [vmem:[#allocation2 + $0xf8] sm:$0xff] }
0x269d   :  { %2861 = vpow2.f32 %v2256_v53  ;;  %v2748_v53 = vpack.c.bf16 %v2007_v52, %v2006_v51 }
0x26a7   :  { %v2862_v54 = vpop.eup %2861 }
0x26a8   :  { %v1713_v55 = vadd.f32 1.0, %v2862_v54  ;;  %v2008_v54 = vld [vmem:[#allocation2 + $0x100] sm:$0xff] }
0x26aa   :  { %2863 = vrcp.f32 %v1713_v55  ;;  %v2009_v55 = vld [vmem:[#allocation2 + $0x108] sm:$0xff] }
0x26b4   :  { %v2864_v56 = vpop.eup %2863 }
0x26b5   :  { %v1726_v63 = vsub.f32 1.0, %v2864_v56  ;;  %v1734_v3 = vmul.f32 %v2864_v56, %v1732_v62  ;;  %v2014_v62 = vld [vmem:[#allocation2 + $0x130] sm:$0xff] }
0x270b   :  { %v1717_v57 = vpop.permute.xlu0 %1716 }
0x270c   :  { %v1719_v58 = vmul.f32 %v2864_v56, %v1717_v57  ;;  %v2751_v56 = vpack.c.bf16 %v2009_v55, %v2008_v54  ;;  %v2010_v57 = vld [vmem:[#allocation2 + $0x110] sm:$0xff] }
0x270e   :  { %1721 = vrot.lane.b32.xlu1 %v1719_v58, %s2934_s24  ;;  %v2011_v58 = vld [vmem:[#allocation2 + $0x118] sm:$0xff] }
0x2780   :  { %v1722_v59 = vpop.permute.xlu1 %1721 }
0x2781   :  { %v1724_v60 = vadd.f32 %v1722_v59, %v3147_v36  ;;  %v2754_v59 = vpack.c.bf16 %v2011_v58, %v2010_v57 }
0x2783   :  { %2865 = vtanh.f32 %v1724_v60  ;;  %v2013_v60 = vld [vmem:[#allocation2 + $0x128] sm:$0xff] }
0x278d   :  { %v2866_v61 = vpop.eup %2865 }
0x278e   :  { %1728 = vrot.lane.b32.xlu0 %v2866_v61, %s2935_s25 }
0x2800   :  { %v1729_v2 = vpop.permute.xlu0 %1728 }
0x2801   :  { %v1731_v4 = vmul.f32 %v1729_v2, %v1726_v63  ;;  %v2015_v63 = vld [vmem:[#allocation2 + $0x138] sm:$0xff] }
0x2802   :  { %v2760_v2 = vpack.c.bf16 %v2015_v63, %v2014_v62 }
0x2803   :  { %v1735_v5 = vadd.f32 %v1734_v3, %v1731_v4  ;;  %v2016_v3 = vld [vmem:[#allocation2 + $0x140] sm:$0xff]  ;;  %v2017_v4 = vld [vmem:[#allocation2 + $0x148] sm:$0xff] }
0x2805   :  { %v1737_v7 = vrot.slane %v1735_v5, 6  ;;  %v1838_v22 = vrot.slane %v1735_v5, 7  ;;  %v2763_v5 = vpack.c.bf16 %v2017_v4, %v2016_v3 }
0x2807   :  { %1738 = vrot.lane.b32.xlu1 %v1737_v7, %s2935_s25  ;;  %v1927_v7 = vlaneseq }
0x2809   :  { %v1928_v8 = vshrl.u32 %v1927_v7, 7 }
0x2879   :  { %v1739_v15 = vpop.permute.xlu1 %1738 }
0x287a   :  { %2563 = vmatmul.mubr.msk.f32.vlgmr.msra.gmra.mrb[18].mxu0 %vm109_vm1, %v1739_v15 }
0x287b   :  { %2737 = vmatpush3.bf16.msra.mxu0 %v2736_v10  ;;  %2584 = vmatprep.mubr.msk.f32.mxu0 %vm2931_vm0, %v2932_v1  ;;  %v1929_v10 = vsub.s32 0, %v1928_v8 }
0x287c   :  { %2738 = vmatprep.subr.bf16.mxu0 %v2930_v0 }
0x287f   :  { %2740 = vmatpush3.bf16.msra.mxu0 %v2739_v16 }
0x2880   :  { %2622 = vmatprep.subr.mxu0 %v2932_v1 }
0x2882   :  { %2585 = vmatmul.mubr.msk.f32.vlgmr.msra.gmra.mrb[20].mxu0 %vm109_vm1, %v3137_v33 }
0x2883   :  { %2624 = vmatprep.mubr.msk.f32.mxu0 %vm2931_vm0, %v2932_v1 }
0x294d   :  { %v1808_v17 = vpop.f32.mrb[18].mxu0 }
0x294e   :  { %v1809_v18 = vadd.f32 %v1808_v17, %v3133_v29  ;;  %v2564_v6 = vpop.f32.mrb[19].mxu0 }
0x294f   :  { %v2261_v6 = vld [vmem:[#allocation2 + $0x150] ss:$0 sm:$0xff] }
0x2950   :  { %v1813_v19 = vrot.slane %v1809_v18, 1 }
0x2952   :  { %1822 = vrot.lane.b32.xlu0 %v1813_v19, %s2934_s24  ;;  %v1815_v9 = vadd.f32 %v1813_v19, %v3147_v36 }
0x2954   :  { %v2258_v23 = vmul.f32 -1.442695, %v1815_v9  ;;  %v2262_v9 = vld [vmem:[#allocation2 + $0x158] ss:$0 sm:$0xff] }
0x2955   :  { %v3245_v20 = vpop.f32.mrb[20].mxu0 }
0x2956   :  { %v2586_v21 = vpop.f32.mrb[21].mxu0  ;;  %2867 = vpow2.f32 %v2258_v23 }
0x2960   :  { %v2868_v24 = vpop.eup %2867 }
0x2961   :  { %v1819_v25 = vadd.f32 1.0, %v2868_v24 }
0x2963   :  { %2869 = vrcp.f32 %v1819_v25  ;;  %v2108_v25 = vld [vmem:[#allocation2 + $0x160] sm:$0x1] }
0x296d   :  { %v2870_v33 = vpop.eup %2869 }
0x296e   :  { %v1832_v38 = vsub.f32 1.0, %v2870_v33 }
0x29c4   :  { %v1823_v26 = vpop.permute.xlu0 %1822 }
0x29c5   :  { %v1825_v27 = vmul.f32 %v2870_v33, %v1823_v26 }
0x29c7   :  { %1827 = vrot.lane.b32.xlu1 %v1825_v27, %s2934_s24 }
0x2a39   :  { %v1828_v29 = vpop.permute.xlu1 %1827 }
0x2a3a   :  { %v1830_v28 = vadd.f32 %v1828_v29, %v3147_v36  ;;  %v1840_v36 = vmul.f32 %v2870_v33, %v1838_v22  ;;  %v2263_v33 = vld [vmem:[#allocation2 + $0x168] ss:$0 sm:$0xff] }
0x2a3c   :  { %2871 = vtanh.f32 %v1830_v28 }
0x2a46   :  { %v2872_v35 = vpop.eup %2871 }
0x2a47   :  { %1834 = vrot.lane.b32.xlu0 %v2872_v35, %s2935_s25 }
0x2ab9   :  { %v1835_v39 = vpop.permute.xlu0 %1834 }
0x2aba   :  { %v1837_v40 = vmul.f32 %v1835_v39, %v1832_v38 }
0x2abc   :  { %v1841_v41 = vadd.f32 %v1840_v36, %v1837_v40 }
0x2abe   :  { %v1848_v42 = vrot.slane %v1841_v41, 7 }
0x2ac0   :  { %1849 = vrot.lane.b32.xlu1 %v1848_v42, %s2935_s25 }
0x2ac4   :  { %2112 = vperm.xlu1 %2776, %v2109_v43  }
0x2b32   :  { %v1850_v49 = vpop.permute.xlu1 %1849 }
0x2b33   :  { %2574 = vmatmul.mubr.msk.f32.vlgmr.msra.gmra.mrb[14].mxu1 %vm109_vm1, %v1850_v49 }
0x2b34   :  { %2743 = vmatpush3.bf16.msra.mxu1 %v2742_v46  ;;  %2619 = vmatprep.mubr.msk.f32.mxu1 %vm2931_vm0, %v2932_v1  ;;  %v2012_v1 = vld [vmem:[#allocation2 + $0x120] sm:$0xff] }
0x2b35   :  { %2744 = vmatprep.subr.bf16.mxu1 %v2930_v0  ;;  %v2757_v61 = vpack.c.bf16 %v2013_v60, %v2012_v1 }
0x2b38   :  { %2746 = vmatpush3.bf16.msra.mxu1 %v2745_v50 }
0x2b39   :  { %2747 = vmatprep.subr.bf16.mxu1 %v2930_v0 }
0x2b3c   :  { %2749 = vmatpush3.bf16.msra.mxu1 %v2748_v53 }
0x2b3d   :  { %2750 = vmatprep.subr.bf16.mxu1 %v2930_v0 }
0x2b40   :  { %2752 = vmatpush3.bf16.msra.mxu1 %v2751_v56 }
0x2b41   :  { %2753 = vmatprep.subr.bf16.mxu1 %v2930_v0 }
0x2b43   :  { %v2113_v30 = vpop.permute.xlu1 %2112 }
0x2b44   :  { %2755 = vmatpush3.bf16.msra.mxu1 %v2754_v59 }
0x2b45   :  { %2756 = vmatprep.subr.bf16.mxu1 %v2930_v0 }
0x2b48   :  { %2758 = vmatpush3.bf16.msra.mxu1 %v2757_v61 }
0x2b49   :  { %2759 = vmatprep.subr.bf16.mxu1 %v2930_v0 }
0x2b4c   :  { %2761 = vmatpush3.bf16.msra.mxu1 %v2760_v2 }
0x2b4d   :  { %2762 = vmatprep.subr.bf16.mxu1 %v2930_v0 }
0x2b50   :  { %2764 = vmatpush3.bf16.msra.mxu1 %v2763_v5 }
0x2c06   :  { %v1919_v12 = vpop.f32.mrb[14].mxu1 }
0x2c07   :  { %v1920_v13 = vadd.f32 %v1919_v12, %v1846_v11  ;;  %v2575_v15 = vpop.f32.mrb[15].mxu1 }
0x2c09   :  { %v1930_v16 = vrot.slane %v1920_v13, %v1929_v10 }
0x2c0b   :  { %v1998_v17 = vadd.f32 %v3245_v20, %v1930_v16 }
0x2c0d   :  { %v2001_v18 = vmax.f32 %v1998_v17, 0.0 }
0x2c0f   :  { %2620 = vmatmul.mubr.f32.vlgmr.msra.gmra.mrb[16].mxu1 %v2001_v18 }
0x2ce2   :  { %v2089_v19 = vpop.f32.mrb[16].mxu1 }
0x2ce3   :  { %v2090_v21 = vadd.f32 %v2261_v6, %v2089_v19  ;;  %v2621_v0 = vpop.f32.mrb[17].mxu1 }
0x2ce5   :  { %v2093_v23 = vmax.f32 %v2090_v21, 0.0 }
0x2ce7   :  { %2623 = vmatpush3.xpose.msra.mxu0 %v2093_v23  ;;  %v2099_v24 = vmul.f32 %v2262_v9, %v2093_v23 }
0x2ce9   :  { %2100 = vadd.xlane.f32.xlu0 %v2099_v24 }
0x2cea   :  { %2625 = vmatmul.mubr.f32.vlgmr.msra.gmra.mrb[22].mxu0 %v2108_v25 }
0x2d76   :  { %v2101_v26 = vpop.xlane.xlu0 %2100 }
0x2d77   :  { %v2107_v27 = vadd.f32 %v2263_v33, %v2101_v26 }
0x2d79   :  { %2873 = vrcp.f32 %v2107_v27 }
0x2d83   :  { %v2874_v29 = vpop.eup %2873 }
0x2d84   :  { %2192 = vperm.xlu1 %2776, %v2874_v29  }
0x2dbd   :  { %v2181_v20 = vpop.f32.mrb[22].mxu0 }
0x2dbe   :  { %v2626_v28 = vpop.f32.mrb[23].mxu0  ;;  %v2182_v31 = vadd.f32 %v2181_v20, %v2113_v30 }
0x2dc0   :  { %v2189_v14 = vrot.slane %v2182_v31, %v1929_v10 }
0x2e03   :  { %v2193_v32 = vpop.permute.xlu1 %2192 }
0x2e04   :  { %v2195_v34 = vmul.f32 %v2193_v32, %v2189_v14 }
0x2e06   :  { %v2197_v35 = vsel %vm2196_vm2, %v2195_v34, -inf }
0x2e07   :  { %2198 = vmax.xlane.f32.xlu1 %v2197_v35 }
0x2e94   :  { %v2199_v37 = vpop.xlane.xlu1 %2198 }
0x2e95   :  { %v2200_v22 = vsub.f32 %v2195_v34, %v2199_v37 }
0x2e97   :  { %v2201_v38 = vmul.f32 1.442695, %v2200_v22 }
0x2e99   :  { %2875 = vpow2.f32 %v2201_v38 }
0x2ea3   :  { %v2876_v39 = vpop.eup %2875 }
0x2ea4   :  { %v2203_v36 = vsel %vm2196_vm2, %v2876_v39, 0.0 }
0x2ea5   :  { %2204 = vadd.xlane.f32.xlu0 %v2203_v36 }
0x2f32   :  { %v2205_v40 = vpop.xlane.xlu0 %2204 }
0x2f33   :  { %2877 = vrcp.f32 %v2205_v40 }
0x2f3d   :  { %v2878_v41 = vpop.eup %2877 }
0x2f3e   :  { %v2207_v42 = vmul.f32 %v2878_v41, %v2876_v39 }
0x2f40   :  { %2208 = vst.msk [vmem:[#allocation5] sm:$0xff] %vm2196_vm2, %v2207_v42 }
0x2f41   :  { %2912 = shalt.err (!%p2909_p12)
}
0x2f42   :  { %s2913_s16 = scalar_lea.hbm %s3282_s2, 128 }
0x2f43   :  { %p2914_p13 = scmp.ne.s32.totalorder %s3282_s2, %s2913_s16  ;;  %p2917_p0 = scmp.lt.u32.totalorder %s2913_s16, %s3282_s2 }
0x2f45   :  { %p2919_p1 = pnand %p2917_p0, %p2914_p13 }
0x2f47   :  { %2922 = shalt.err (!%p2919_p1)
}
0x2f48   :  { %2218 = dma.vmem_to_hbm [thread:$0]  %s2216_s12, 128, %s3282_s2, [#allocation4]  }
0x2f49   :  { %2925 = dma.done.wait [#allocation4], 128  }
0x2f4a   :  { %2926 = vsyncadd [#allocation4], 4294967168 }
0x2f4b   :  { %2222 = vsyncpa [#allocation3], 1 }
0x2f4c   :  { %2223 = vsyncpa [#allocation4], 1 }

</bundles_post_ra>
